<compile_context>
chip_gen: v6e
topology: v6e:2x2x1
jax: 0.10.0
libtpu: 0.0.40
codegen_flags: <defaults>
</compile_context>

<pallas_src>
from functools import partial

import jax
import jax.numpy as jnp
from jax.experimental import pallas as pl
from jax.experimental.pallas import tpu as pltpu


def upsample_kernel(x_mid_ref, x_top_ref, x_bot_ref, w_ref, b_ref, o_ref,
                    xp_ref, op_ref):
    """One grid step = one sample (n) x one row tile (i) -> both row parities.

    x_mid_ref : (1, TH, W, C)      interior rows of the tile
    x_top_ref : (1, 1, W, C)       row above the tile (clamped at the image edge)
    x_bot_ref : (1, 1, W, C)       row below the tile (clamped at the image edge)
    w_ref     : (2, 6C, 2C)        fused zero-padded weights, one slab per parity p
    b_ref     : (1, 2C)            bias duplicated for both column parities
    o_ref     : (1, TH, 2, W, 2C)  output block; minor dims (q, c) fused -> lane dense
    xp_ref    : (TH+2, W+2, C)     scratch: zero-padded tile (1-px halo)
    op_ref    : (TH, W, 6C)        scratch: fused column-shift-major MXU operand
    """
    _, TH, W, C = x_mid_ref.shape
    i = pl.program_id(1)
    nt = pl.num_programs(1)

    # ---- build the zero-padded tile: halo-only zeroing, interior written once ----
    # left / right 1-px column halos (always zero, also covers the 4 corners)
    xp_ref[:, 0:1, :] = jnp.zeros((TH + 2, 1, C), xp_ref.dtype)
    xp_ref[:, W + 1:W + 2, :] = jnp.zeros((TH + 2, 1, C), xp_ref.dtype)
    # interior rows of the tile
    xp_ref[1:TH + 1, 1:W + 1, :] = x_mid_ref[0]

    # top halo row: neighbour row from HBM, or zeros at the image edge
    @pl.when(i == 0)
    def _():
        xp_ref[0:1, 1:W + 1, :] = jnp.zeros((1, W, C), xp_ref.dtype)

    @pl.when(i > 0)
    def _():
        xp_ref[0:1, 1:W + 1, :] = x_top_ref[0]

    # bottom halo row
    @pl.when(i == nt - 1)
    def _():
        xp_ref[TH + 1:TH + 2, 1:W + 1, :] = jnp.zeros((1, W, C), xp_ref.dtype)

    @pl.when(i < nt - 1)
    def _():
        xp_ref[TH + 1:TH + 2, 1:W + 1, :] = x_bot_ref[0]

    bias = b_ref[...]                                  # (1, 2C), hoisted out of the loop

    # Output rows 2h+p use kernel rows kh = 1-p (padded row start p+1) and
    # kh = 3-p (padded row start p); output cols 2w+q use kw = 1-q (padded col
    # start q+1) and kw = 3-q (padded col start q).
    for p in (0, 1):                                   # row parity; static -> unrolled
        # Column-shift-major operand: slabs (shift s, row start p+1) and
        # (shift s, row start p) for s = 0, 1, 2.  The shared shift-1 slabs are
        # stored once; q=0 consumes columns [0:4C], q=1 columns [2C:6C] of the
        # fused weight (unused rows are zero there).
        for s in (0, 1, 2):
            op_ref[:, :, (2 * s) * C:(2 * s + 1) * C] = \
                xp_ref[p + 1:p + 1 + TH, s:s + W, :]
            op_ref[:, :, (2 * s + 1) * C:(2 * s + 2) * C] = \
                xp_ref[p:p + TH, s:s + W, :]

        # One MXU matmul per parity: K = 6C, N = 2C, f32 accumulate.
        # TODO(synk): for v5e (128-wide MXU) with C >= 128, two windowed
        # matmuls on op[:, 0:4C] / op[:, 2C:6C] avoid the 1.5x K of the
        # zero-padded fused weight; benchmark and pick per generation.
        y = jnp.dot(op_ref[...].reshape(TH * W, 6 * C), w_ref[p],
                    preferred_element_type=jnp.float32)
        y = (y + bias).reshape(TH, W, 2 * C)

        # Single full-width (W, 2C) lane-dense store; the (N, H, 2, W, 2C)
        # output reinterprets as interleaved (N, 2H, 2W, C).
        o_ref[0, :, p, :, :] = y.astype(o_ref.dtype)


def _fused_phase_weights(w):
    """PyTorch ConvTranspose2d weight (C_in, C_out, 4, 4) -> (2, 6*C_in, 2*C_out).

    Contraction-row slabs s0..s5 match the column-shift-major operand layout
    built in the kernel:
        s0=(shift0, kh=1-p)  s1=(shift0, kh=3-p)
        s2=(shift1, kh=1-p)  s3=(shift1, kh=3-p)
        s4=(shift2, kh=1-p)  s5=(shift2, kh=3-p)
    Output columns [0:C] are column parity q=0 (uses s0..s3), [C:2C] are q=1
    (uses s2..s5); unused slabs are zero so both parities come from one matmul.
    """
    c_in, c_out = w.shape[0], w.shape[1]
    z = jnp.zeros((c_in, c_out), w.dtype)
    phases = []
    for p in (0, 1):
        q0 = jnp.concatenate(
            [w[:, :, 1 - p, 3], w[:, :, 3 - p, 3],
             w[:, :, 1 - p, 1], w[:, :, 3 - p, 1], z, z], axis=0)
        q1 = jnp.concatenate(
            [z, z, w[:, :, 1 - p, 2], w[:, :, 3 - p, 2],
             w[:, :, 1 - p, 0], w[:, :, 3 - p, 0]], axis=0)
        phases.append(jnp.concatenate([q0, q1], axis=1))    # (6C, 2C)
    return jnp.stack(phases)                                 # (2, 6C, 2C)


def _vmem_limit_bytes():
    """Generation-aware limit: ~3/4 of physical VMEM (48 MiB on v7x, ~96 MiB on
    v5e/v6e); conservative 48 MiB fallback if the query is unavailable."""
    cap = 0
    try:
        cap = int(getattr(pltpu.get_tpu_info(), "vmem_capacity_bytes", 0) or 0)
    except Exception:
        cap = 0
    if not cap:
        cap = 64 * 1024 * 1024
    return cap * 3 // 4


# Per-step VMEM per f32 input pixel-channel of the tile:
#   8 (x double-buf) + 32 (out double-buf, 4x pixels) + 4 (padded tile) + 24 (6C operand)
_BYTES_PER_TILE_PIXCHAN_F32 = 68


def _pick_tile_rows(H, W, C, itemsize, budget_bytes=40 * 1024 * 1024):
    """Largest multiple-of-8 row tile that divides H and fits the VMEM budget."""
    per_row = _BYTES_PER_TILE_PIXCHAN_F32 * (itemsize / 4.0) * W * C
    cands = [t for t in range(8, H + 1, 8) if H % t == 0]
    if not cands:
        return H                    # odd height: one tile per sample (still correct)
    th = cands[0]
    for t in cands:
        if t * per_row <= budget_bytes:
            th = t
    return th


def upsample_nhwc(x_nhwc, w, b, *, tile_rows=None):
    """Core TPU path: NHWC in -> interleaved NHWC (N, 2H, 2W, C) out."""
    N, H, W, C = x_nhwc.shape
    TH = tile_rows if tile_rows is not None else _pick_tile_rows(
        H, W, C, x_nhwc.dtype.itemsize)
    assert H % TH == 0, (H, TH)
    nt = H // TH
    # TODO(synk): for very wide images (W*C alone near the budget) add a column
    # tile axis with the same 1-px halo structure.

    w_fused = _fused_phase_weights(w)                       # (2, 6C, 2C)
    b2 = jnp.concatenate([b, b]).reshape(1, 2 * C)          # bias for the fused 2C output

    out = pl.pallas_call(
        upsample_kernel,
        out_shape=jax.ShapeDtypeStruct((N, H, 2, W, 2 * C), x_nhwc.dtype),
        grid=(N, nt),
        in_specs=[
            # interior rows of the tile
            pl.BlockSpec((1, TH, W, C), lambda n, i: (n, i, 0, 0)),
            # 1-row halos above / below the tile (clamped; zeroed in-kernel at edges)
            pl.BlockSpec((1, 1, W, C),
                         lambda n, i: (n, jnp.maximum(i * TH - 1, 0), 0, 0)),
            pl.BlockSpec((1, 1, W, C),
                         lambda n, i: (n, jnp.minimum(i * TH + TH, H - 1), 0, 0)),
            pl.BlockSpec((2, 6 * C, 2 * C), lambda n, i: (0, 0, 0)),
            pl.BlockSpec((1, 2 * C), lambda n, i: (0, 0)),
        ],
        out_specs=pl.BlockSpec((1, TH, 2, W, 2 * C),
                               lambda n, i: (n, i, 0, 0, 0)),
        scratch_shapes=[
            pltpu.VMEM((TH + 2, W + 2, C), x_nhwc.dtype),   # zero-padded tile
            pltpu.VMEM((TH, W, 6 * C), x_nhwc.dtype),       # fused matmul operand
        ],
        compiler_params=pltpu.CompilerParams(
            dimension_semantics=("parallel", "parallel"),   # steps self-contained
            vmem_limit_bytes=_vmem_limit_bytes(),
        ),
    )(x_nhwc, x_nhwc, x_nhwc, w_fused, b2)

    # Contiguity-preserving (free) reshape: (N, H, 2, W, 2C) -> (N, 2H, 2W, C).
    return out.reshape(N, 2 * H, 2 * W, C)


@partial(jax.jit, static_argnames=("tile_rows",))
def upsample_conv_transpose(x_nchw, w, b, *, tile_rows=None):
    """ConvTranspose2d(C, C, (4,4), (2,2), (1,1)) with the PyTorch NCHW interface.

    x_nchw: (N, C, H, W) float32
    w:      (C_in, C_out, 4, 4)  PyTorch ConvTranspose2d weight layout
    b:      (C_out,)
    returns (N, C, 2H, 2W)
    """
    # TODO(synk): in a TPU-resident network keep activations NHWC end-to-end and
    # call upsample_nhwc directly so these two boundary transposes disappear.
    x_nhwc = jnp.transpose(x_nchw, (0, 2, 3, 1))
    y_nhwc = upsample_nhwc(x_nhwc, w, b, tile_rows=tile_rows)
    return jnp.transpose(y_nhwc, (0, 3, 1, 2))


if __name__ == "__main__":
    key = jax.random.PRNGKey(0)
    kx, kw, kb = jax.random.split(key, 3)

    N, C, H, W = 2, 4, 16, 16
    x = jax.random.normal(kx, (N, C, H, W), jnp.float32)

    # Deterministic parameter init (PyTorch-ish uniform bound); shapes from
    # nn.ConvTranspose2d(C, C, (4,4), (2,2), (1,1)): weight (C, C, 4, 4), bias (C,)
    bound = 1.0 / (C * 4 * 4) ** 0.5
    w = jax.random.uniform(kw, (C, C, 4, 4), jnp.float32, -bound, bound)
    b = jax.random.uniform(kb, (C,), jnp.float32, -bound, bound)

    # Reference: convT(k=4, s=2, p=1) == conv(dilate_2(x), spatially-flipped &
    # channel-swapped weights, padding = k-1-p = 2).
    w_ref = jnp.transpose(w[:, :, ::-1, ::-1], (1, 0, 2, 3))  # OIHW
    ref = jax.lax.conv_general_dilated(
        x, w_ref, window_strides=(1, 1), padding=[(2, 2), (2, 2)],
        lhs_dilation=(2, 2),
        dimension_numbers=("NCHW", "OIHW", "NCHW")) + b.reshape(1, C, 1, 1)

    # Multi-row-tile path (exercises the halo DMA / edge zeroing): 2 tiles of 8 rows.
    y = jax.block_until_ready(upsample_conv_transpose(x, w, b, tile_rows=8))
    assert y.shape == (N, C, 2 * H, 2 * W), y.shape
    err = float(jnp.max(jnp.abs(y - ref)))
    assert jnp.allclose(y, ref, atol=2e-3, rtol=2e-3), f"max abs err = {err}"

    # Auto tile-size path (single tile per sample here).
    y2 = jax.block_until_ready(upsample_conv_transpose(x, w, b))
    err2 = float(jnp.max(jnp.abs(y2 - ref)))
    assert jnp.allclose(y2, ref, atol=2e-3, rtol=2e-3), f"max abs err = {err2}"

    print("KERNEL_OK")
</pallas_src>

<mosaic_0001>
module attributes {stable_mosaic.version = 11 : i64} {
  func.func @upsample_kernel(%arg0: i32, %arg1: i32, %arg2: memref<1x8x16x4xf32, #tpu.memory_space<vmem>>, %arg3: memref<1x1x16x4xf32, #tpu.memory_space<vmem>>, %arg4: memref<1x1x16x4xf32, #tpu.memory_space<vmem>>, %arg5: memref<2x24x8xf32, #tpu.memory_space<vmem>>, %arg6: memref<1x8xf32, #tpu.memory_space<vmem>>, %arg7: memref<1x8x2x16x8xf32, #tpu.memory_space<vmem>>, %arg8: memref<10x18x4xf32, #tpu.memory_space<vmem>>, %arg9: memref<8x16x24xf32, #tpu.memory_space<vmem>>) attributes {dimension_semantics = [#tpu.dimension_semantics<parallel>, #tpu.dimension_semantics<parallel>], iteration_bounds = array<i64: 2, 2>, scalar_prefetch = 0 : i64, scratch_operands = 2 : i64, tpu.core_type = #tpu.core_type<tc>, window_params = [{transform_indices = @transform_0, window_bounds = array<i64: 1, 8, 16, 4>}, {transform_indices = @transform_1, window_bounds = array<i64: 1, 1, 16, 4>}, {transform_indices = @transform_2, window_bounds = array<i64: 1, 1, 16, 4>}, {pipeline_mode = #tpu.pipeline_mode<synchronous>, transform_indices = @transform_3, window_bounds = array<i64: 2, 24, 8>}, {pipeline_mode = #tpu.pipeline_mode<synchronous>, transform_indices = @transform_4, window_bounds = array<i64: 1, 8>}, {transform_indices = @transform_5, window_bounds = array<i64: 1, 8, 2, 16, 8>}]} {
    %cst = arith.constant 0.000000e+00 : f32
    %0 = vector.broadcast %cst : f32 to vector<10x1x4xf32>
    %c0 = arith.constant 0 : index
    %c0_0 = arith.constant 0 : index
    %c0_1 = arith.constant 0 : index
    %1 = vector.load %arg8[%c0, %c0_0, %c0_1] : memref<10x18x4xf32, #tpu.memory_space<vmem>>, vector<10x1x4xf32>
    tpu.vector_store %arg8[%c0, %c0_0, %c0_1], %0 {strides = array<i32>} : memref<10x18x4xf32, #tpu.memory_space<vmem>>, vector<10x1x4xf32>,
    %cst_2 = arith.constant 0.000000e+00 : f32
    %2 = vector.broadcast %cst_2 : f32 to vector<10x1x4xf32>
    %c0_3 = arith.constant 0 : index
    %c17 = arith.constant 17 : index
    %c0_4 = arith.constant 0 : index
    %3 = vector.load %arg8[%c0_3, %c17, %c0_4] : memref<10x18x4xf32, #tpu.memory_space<vmem>>, vector<10x1x4xf32>
    tpu.vector_store %arg8[%c0_3, %c17, %c0_4], %2 {strides = array<i32>} : memref<10x18x4xf32, #tpu.memory_space<vmem>>, vector<10x1x4xf32>,
    %c0_5 = arith.constant 0 : index
    %c0_6 = arith.constant 0 : index
    %c0_7 = arith.constant 0 : index
    %c0_8 = arith.constant 0 : index
    %4 = vector.load %arg2[%c0_5, %c0_6, %c0_7, %c0_8] : memref<1x8x16x4xf32, #tpu.memory_space<vmem>>, vector<1x8x16x4xf32>
    %5 = vector.shape_cast %4 : vector<1x8x16x4xf32> to vector<8x16x4xf32>
    %c1 = arith.constant 1 : index
    %c1_9 = arith.constant 1 : index
    %c0_10 = arith.constant 0 : index
    %6 = vector.load %arg8[%c1, %c1_9, %c0_10] : memref<10x18x4xf32, #tpu.memory_space<vmem>>, vector<8x16x4xf32>
    tpu.vector_store %arg8[%c1, %c1_9, %c0_10], %5 {strides = array<i32>} : memref<10x18x4xf32, #tpu.memory_space<vmem>>, vector<8x16x4xf32>,
    %c0_i32 = arith.constant 0 : i32
    %7 = arith.cmpi eq, %arg1, %c0_i32 : i32
    %8 = arith.extui %7 : i1 to i32
    %c0_i32_11 = arith.constant 0 : i32
    %9 = arith.cmpi ne, %8, %c0_i32_11 : i32
    scf.if %9 {
      %cst_109 = arith.constant 0.000000e+00 : f32
      %66 = vector.broadcast %cst_109 : f32 to vector<1x16x4xf32>
      %c0_110 = arith.constant 0 : index
      %c1_111 = arith.constant 1 : index
      %c0_112 = arith.constant 0 : index
      %67 = vector.load %arg8[%c0_110, %c1_111, %c0_112] : memref<10x18x4xf32, #tpu.memory_space<vmem>>, vector<1x16x4xf32>
      tpu.vector_store %arg8[%c0_110, %c1_111, %c0_112], %66 {strides = array<i32>} : memref<10x18x4xf32, #tpu.memory_space<vmem>>, vector<1x16x4xf32>,
    } else {
    }
    %c0_i32_12 = arith.constant 0 : i32
    %10 = arith.cmpi sgt, %arg1, %c0_i32_12 : i32
    %11 = arith.extui %10 : i1 to i32
    %c0_i32_13 = arith.constant 0 : i32
    %12 = arith.cmpi ne, %11, %c0_i32_13 : i32
    scf.if %12 {
      %c0_109 = arith.constant 0 : index
      %c0_110 = arith.constant 0 : index
      %c0_111 = arith.constant 0 : index
      %c0_112 = arith.constant 0 : index
      %66 = vector.load %arg3[%c0_109, %c0_110, %c0_111, %c0_112] : memref<1x1x16x4xf32, #tpu.memory_space<vmem>>, vector<1x1x16x4xf32>
      %67 = vector.shape_cast %66 : vector<1x1x16x4xf32> to vector<1x16x4xf32>
      %c0_113 = arith.constant 0 : index
      %c1_114 = arith.constant 1 : index
      %c0_115 = arith.constant 0 : index
      %68 = vector.load %arg8[%c0_113, %c1_114, %c0_115] : memref<10x18x4xf32, #tpu.memory_space<vmem>>, vector<1x16x4xf32>
      tpu.vector_store %arg8[%c0_113, %c1_114, %c0_115], %67 {strides = array<i32>} : memref<10x18x4xf32, #tpu.memory_space<vmem>>, vector<1x16x4xf32>,
    } else {
    }
    %c1_i32 = arith.constant 1 : i32
    %13 = arith.cmpi eq, %arg1, %c1_i32 : i32
    %14 = arith.extui %13 : i1 to i32
    %c0_i32_14 = arith.constant 0 : i32
    %15 = arith.cmpi ne, %14, %c0_i32_14 : i32
    scf.if %15 {
      %cst_109 = arith.constant 0.000000e+00 : f32
      %66 = vector.broadcast %cst_109 : f32 to vector<1x16x4xf32>
      %c9 = arith.constant 9 : index
      %c1_110 = arith.constant 1 : index
      %c0_111 = arith.constant 0 : index
      %67 = vector.load %arg8[%c9, %c1_110, %c0_111] : memref<10x18x4xf32, #tpu.memory_space<vmem>>, vector<1x16x4xf32>
      tpu.vector_store %arg8[%c9, %c1_110, %c0_111], %66 {strides = array<i32>} : memref<10x18x4xf32, #tpu.memory_space<vmem>>, vector<1x16x4xf32>,
    } else {
    }
    %c1_i32_15 = arith.constant 1 : i32
    %16 = arith.cmpi slt, %arg1, %c1_i32_15 : i32
    %17 = arith.extui %16 : i1 to i32
    %c0_i32_16 = arith.constant 0 : i32
    %18 = arith.cmpi ne, %17, %c0_i32_16 : i32
    scf.if %18 {
      %c0_109 = arith.constant 0 : index
      %c0_110 = arith.constant 0 : index
      %c0_111 = arith.constant 0 : index
      %c0_112 = arith.constant 0 : index
      %66 = vector.load %arg4[%c0_109, %c0_110, %c0_111, %c0_112] : memref<1x1x16x4xf32, #tpu.memory_space<vmem>>, vector<1x1x16x4xf32>
      %67 = vector.shape_cast %66 : vector<1x1x16x4xf32> to vector<1x16x4xf32>
      %c9 = arith.constant 9 : index
      %c1_113 = arith.constant 1 : index
      %c0_114 = arith.constant 0 : index
      %68 = vector.load %arg8[%c9, %c1_113, %c0_114] : memref<10x18x4xf32, #tpu.memory_space<vmem>>, vector<1x16x4xf32>
      tpu.vector_store %arg8[%c9, %c1_113, %c0_114], %67 {strides = array<i32>} : memref<10x18x4xf32, #tpu.memory_space<vmem>>, vector<1x16x4xf32>,
    } else {
    }
    %c0_17 = arith.constant 0 : index
    %c0_18 = arith.constant 0 : index
    %19 = vector.load %arg6[%c0_17, %c0_18] : memref<1x8xf32, #tpu.memory_space<vmem>>, vector<1x8xf32>
    %c1_19 = arith.constant 1 : index
    %c0_20 = arith.constant 0 : index
    %c0_21 = arith.constant 0 : index
    %20 = vector.load %arg8[%c1_19, %c0_20, %c0_21] : memref<10x18x4xf32, #tpu.memory_space<vmem>>, vector<8x16x4xf32>
    %c0_22 = arith.constant 0 : index
    %c0_23 = arith.constant 0 : index
    %c0_24 = arith.constant 0 : index
    %21 = vector.load %arg9[%c0_22, %c0_23, %c0_24] : memref<8x16x24xf32, #tpu.memory_space<vmem>>, vector<8x16x4xf32>
    tpu.vector_store %arg9[%c0_22, %c0_23, %c0_24], %20 {strides = array<i32>} : memref<8x16x24xf32, #tpu.memory_space<vmem>>, vector<8x16x4xf32>,
    %c0_25 = arith.constant 0 : index
    %c0_26 = arith.constant 0 : index
    %c0_27 = arith.constant 0 : index
    %22 = vector.load %arg8[%c0_25, %c0_26, %c0_27] : memref<10x18x4xf32, #tpu.memory_space<vmem>>, vector<8x16x4xf32>
    %c0_28 = arith.constant 0 : index
    %c0_29 = arith.constant 0 : index
    %c4 = arith.constant 4 : index
    %23 = vector.load %arg9[%c0_28, %c0_29, %c4] : memref<8x16x24xf32, #tpu.memory_space<vmem>>, vector<8x16x4xf32>
    tpu.vector_store %arg9[%c0_28, %c0_29, %c4], %22 {strides = array<i32>} : memref<8x16x24xf32, #tpu.memory_space<vmem>>, vector<8x16x4xf32>,
    %c1_30 = arith.constant 1 : index
    %c1_31 = arith.constant 1 : index
    %c0_32 = arith.constant 0 : index
    %24 = vector.load %arg8[%c1_30, %c1_31, %c0_32] : memref<10x18x4xf32, #tpu.memory_space<vmem>>, vector<8x16x4xf32>
    %c0_33 = arith.constant 0 : index
    %c0_34 = arith.constant 0 : index
    %c8 = arith.constant 8 : index
    %25 = vector.load %arg9[%c0_33, %c0_34, %c8] : memref<8x16x24xf32, #tpu.memory_space<vmem>>, vector<8x16x4xf32>
    tpu.vector_store %arg9[%c0_33, %c0_34, %c8], %24 {strides = array<i32>} : memref<8x16x24xf32, #tpu.memory_space<vmem>>, vector<8x16x4xf32>,
    %c0_35 = arith.constant 0 : index
    %c1_36 = arith.constant 1 : index
    %c0_37 = arith.constant 0 : index
    %26 = vector.load %arg8[%c0_35, %c1_36, %c0_37] : memref<10x18x4xf32, #tpu.memory_space<vmem>>, vector<8x16x4xf32>
    %c0_38 = arith.constant 0 : index
    %c0_39 = arith.constant 0 : index
    %c12 = arith.constant 12 : index
    %27 = vector.load %arg9[%c0_38, %c0_39, %c12] : memref<8x16x24xf32, #tpu.memory_space<vmem>>, vector<8x16x4xf32>
    tpu.vector_store %arg9[%c0_38, %c0_39, %c12], %26 {strides = array<i32>} : memref<8x16x24xf32, #tpu.memory_space<vmem>>, vector<8x16x4xf32>,
    %c1_40 = arith.constant 1 : index
    %c2 = arith.constant 2 : index
    %c0_41 = arith.constant 0 : index
    %28 = vector.load %arg8[%c1_40, %c2, %c0_41] : memref<10x18x4xf32, #tpu.memory_space<vmem>>, vector<8x16x4xf32>
    %c0_42 = arith.constant 0 : index
    %c0_43 = arith.constant 0 : index
    %c16 = arith.constant 16 : index
    %29 = vector.load %arg9[%c0_42, %c0_43, %c16] : memref<8x16x24xf32, #tpu.memory_space<vmem>>, vector<8x16x4xf32>
    tpu.vector_store %arg9[%c0_42, %c0_43, %c16], %28 {strides = array<i32>} : memref<8x16x24xf32, #tpu.memory_space<vmem>>, vector<8x16x4xf32>,
    %c0_44 = arith.constant 0 : index
    %c2_45 = arith.constant 2 : index
    %c0_46 = arith.constant 0 : index
    %30 = vector.load %arg8[%c0_44, %c2_45, %c0_46] : memref<10x18x4xf32, #tpu.memory_space<vmem>>, vector<8x16x4xf32>
    %c0_47 = arith.constant 0 : index
    %c0_48 = arith.constant 0 : index
    %c20 = arith.constant 20 : index
    %31 = vector.load %arg9[%c0_47, %c0_48, %c20] : memref<8x16x24xf32, #tpu.memory_space<vmem>>, vector<8x16x4xf32>
    tpu.vector_store %arg9[%c0_47, %c0_48, %c20], %30 {strides = array<i32>} : memref<8x16x24xf32, #tpu.memory_space<vmem>>, vector<8x16x4xf32>,
    %c0_49 = arith.constant 0 : index
    %c0_50 = arith.constant 0 : index
    %c0_51 = arith.constant 0 : index
    %32 = vector.load %arg9[%c0_49, %c0_50, %c0_51] : memref<8x16x24xf32, #tpu.memory_space<vmem>>, vector<8x16x24xf32>
    %33 = vector.shape_cast %32 : vector<8x16x24xf32> to vector<128x24xf32>
    %c0_52 = arith.constant 0 : index
    %c0_53 = arith.constant 0 : index
    %c0_54 = arith.constant 0 : index
    %34 = vector.load %arg5[%c0_52, %c0_53, %c0_54] : memref<2x24x8xf32, #tpu.memory_space<vmem>>, vector<1x24x8xf32>
    %35 = vector.shape_cast %34 : vector<1x24x8xf32> to vector<24x8xf32>
    %cst_55 = arith.constant dense<0.000000e+00> : vector<128x8xf32>
    %36 = tpu.matmul %33, %35, %cst_55 {dimension_numbers = #tpu.dot_dimension_numbers<[1], [0], [0], [1], [0, 0, 1, 1], [], []>} : vector<128x24xf32>, vector<24x8xf32>, vector<128x8xf32> -> vector<128x8xf32>
    %37 = vector.broadcast %19 : vector<1x8xf32> to vector<128x8xf32>
    %38 = arith.addf %36, %37 : vector<128x8xf32>
    %39 = vector.shape_cast %38 : vector<128x8xf32> to vector<8x16x8xf32>
    %c0_56 = arith.constant 0 : index
    %c0_57 = arith.constant 0 : index
    %c0_58 = arith.constant 0 : index
    %c0_59 = arith.constant 0 : index
    %c0_60 = arith.constant 0 : index
    %40 = vector.load %arg7[%c0_56, %c0_57, %c0_58, %c0_59, %c0_60] : memref<1x8x2x16x8xf32, #tpu.memory_space<vmem>>, vector<1x8x1x16x8xf32>
    %41 = vector.shape_cast %40 : vector<1x8x1x16x8xf32> to vector<8x16x8xf32>
    %42 = vector.shape_cast %39 : vector<8x16x8xf32> to vector<1x8x1x16x8xf32>
    tpu.vector_store %arg7[%c0_56, %c0_57, %c0_58, %c0_59, %c0_60], %42 {strides = array<i32>} : memref<1x8x2x16x8xf32, #tpu.memory_space<vmem>>, vector<1x8x1x16x8xf32>,
    %c2_61 = arith.constant 2 : index
    %c0_62 = arith.constant 0 : index
    %c0_63 = arith.constant 0 : index
    %43 = vector.load %arg8[%c2_61, %c0_62, %c0_63] : memref<10x18x4xf32, #tpu.memory_space<vmem>>, vector<8x16x4xf32>
    %c0_64 = arith.constant 0 : index
    %c0_65 = arith.constant 0 : index
    %c0_66 = arith.constant 0 : index
    %44 = vector.load %arg9[%c0_64, %c0_65, %c0_66] : memref<8x16x24xf32, #tpu.memory_space<vmem>>, vector<8x16x4xf32>
    tpu.vector_store %arg9[%c0_64, %c0_65, %c0_66], %43 {strides = array<i32>} : memref<8x16x24xf32, #tpu.memory_space<vmem>>, vector<8x16x4xf32>,
    %c1_67 = arith.constant 1 : index
    %c0_68 = arith.constant 0 : index
    %c0_69 = arith.constant 0 : index
    %45 = vector.load %arg8[%c1_67, %c0_68, %c0_69] : memref<10x18x4xf32, #tpu.memory_space<vmem>>, vector<8x16x4xf32>
    %c0_70 = arith.constant 0 : index
    %c0_71 = arith.constant 0 : index
    %c4_72 = arith.constant 4 : index
    %46 = vector.load %arg9[%c0_70, %c0_71, %c4_72] : memref<8x16x24xf32, #tpu.memory_space<vmem>>, vector<8x16x4xf32>
    tpu.vector_store %arg9[%c0_70, %c0_71, %c4_72], %45 {strides = array<i32>} : memref<8x16x24xf32, #tpu.memory_space<vmem>>, vector<8x16x4xf32>,
    %c2_73 = arith.constant 2 : index
    %c1_74 = arith.constant 1 : index
    %c0_75 = arith.constant 0 : index
    %47 = vector.load %arg8[%c2_73, %c1_74, %c0_75] : memref<10x18x4xf32, #tpu.memory_space<vmem>>, vector<8x16x4xf32>
    %c0_76 = arith.constant 0 : index
    %c0_77 = arith.constant 0 : index
    %c8_78 = arith.constant 8 : index
    %48 = vector.load %arg9[%c0_76, %c0_77, %c8_78] : memref<8x16x24xf32, #tpu.memory_space<vmem>>, vector<8x16x4xf32>
    tpu.vector_store %arg9[%c0_76, %c0_77, %c8_78], %47 {strides = array<i32>} : memref<8x16x24xf32, #tpu.memory_space<vmem>>, vector<8x16x4xf32>,
    %c1_79 = arith.constant 1 : index
    %c1_80 = arith.constant 1 : index
    %c0_81 = arith.constant 0 : index
    %49 = vector.load %arg8[%c1_79, %c1_80, %c0_81] : memref<10x18x4xf32, #tpu.memory_space<vmem>>, vector<8x16x4xf32>
    %c0_82 = arith.constant 0 : index
    %c0_83 = arith.constant 0 : index
    %c12_84 = arith.constant 12 : index
    %50 = vector.load %arg9[%c0_82, %c0_83, %c12_84] : memref<8x16x24xf32, #tpu.memory_space<vmem>>, vector<8x16x4xf32>
    tpu.vector_store %arg9[%c0_82, %c0_83, %c12_84], %49 {strides = array<i32>} : memref<8x16x24xf32, #tpu.memory_space<vmem>>, vector<8x16x4xf32>,
    %c2_85 = arith.constant 2 : index
    %c2_86 = arith.constant 2 : index
    %c0_87 = arith.constant 0 : index
    %51 = vector.load %arg8[%c2_85, %c2_86, %c0_87] : memref<10x18x4xf32, #tpu.memory_space<vmem>>, vector<8x16x4xf32>
    %c0_88 = arith.constant 0 : index
    %c0_89 = arith.constant 0 : index
    %c16_90 = arith.constant 16 : index
    %52 = vector.load %arg9[%c0_88, %c0_89, %c16_90] : memref<8x16x24xf32, #tpu.memory_space<vmem>>, vector<8x16x4xf32>
    tpu.vector_store %arg9[%c0_88, %c0_89, %c16_90], %51 {strides = array<i32>} : memref<8x16x24xf32, #tpu.memory_space<vmem>>, vector<8x16x4xf32>,
    %c1_91 = arith.constant 1 : index
    %c2_92 = arith.constant 2 : index
    %c0_93 = arith.constant 0 : index
    %53 = vector.load %arg8[%c1_91, %c2_92, %c0_93] : memref<10x18x4xf32, #tpu.memory_space<vmem>>, vector<8x16x4xf32>
    %c0_94 = arith.constant 0 : index
    %c0_95 = arith.constant 0 : index
    %c20_96 = arith.constant 20 : index
    %54 = vector.load %arg9[%c0_94, %c0_95, %c20_96] : memref<8x16x24xf32, #tpu.memory_space<vmem>>, vector<8x16x4xf32>
    tpu.vector_store %arg9[%c0_94, %c0_95, %c20_96], %53 {strides = array<i32>} : memref<8x16x24xf32, #tpu.memory_space<vmem>>, vector<8x16x4xf32>,
    %c0_97 = arith.constant 0 : index
    %c0_98 = arith.constant 0 : index
    %c0_99 = arith.constant 0 : index
    %55 = vector.load %arg9[%c0_97, %c0_98, %c0_99] : memref<8x16x24xf32, #tpu.memory_space<vmem>>, vector<8x16x24xf32>
    %56 = vector.shape_cast %55 : vector<8x16x24xf32> to vector<128x24xf32>
    %c1_100 = arith.constant 1 : index
    %c0_101 = arith.constant 0 : index
    %c0_102 = arith.constant 0 : index
    %57 = vector.load %arg5[%c1_100, %c0_101, %c0_102] : memref<2x24x8xf32, #tpu.memory_space<vmem>>, vector<1x24x8xf32>
    %58 = vector.shape_cast %57 : vector<1x24x8xf32> to vector<24x8xf32>
    %cst_103 = arith.constant dense<0.000000e+00> : vector<128x8xf32>
    %59 = tpu.matmul %56, %58, %cst_103 {dimension_numbers = #tpu.dot_dimension_numbers<[1], [0], [0], [1], [0, 0, 1, 1], [], []>} : vector<128x24xf32>, vector<24x8xf32>, vector<128x8xf32> -> vector<128x8xf32>
    %60 = vector.broadcast %19 : vector<1x8xf32> to vector<128x8xf32>
    %61 = arith.addf %59, %60 : vector<128x8xf32>
    %62 = vector.shape_cast %61 : vector<128x8xf32> to vector<8x16x8xf32>
    %c0_104 = arith.constant 0 : index
    %c0_105 = arith.constant 0 : index
    %c1_106 = arith.constant 1 : index
    %c0_107 = arith.constant 0 : index
    %c0_108 = arith.constant 0 : index
    %63 = vector.load %arg7[%c0_104, %c0_105, %c1_106, %c0_107, %c0_108] : memref<1x8x2x16x8xf32, #tpu.memory_space<vmem>>, vector<1x8x1x16x8xf32>
    %64 = vector.shape_cast %63 : vector<1x8x1x16x8xf32> to vector<8x16x8xf32>
    %65 = vector.shape_cast %62 : vector<8x16x8xf32> to vector<1x8x1x16x8xf32>
    tpu.vector_store %arg7[%c0_104, %c0_105, %c1_106, %c0_107, %c0_108], %65 {strides = array<i32>} : memref<1x8x2x16x8xf32, #tpu.memory_space<vmem>>, vector<1x8x1x16x8xf32>,
    return
  }
  func.func @transform_0(%arg0: i32, %arg1: i32) -> (i32, i32, i32, i32) {
    %c0_i32 = arith.constant 0 : i32
    %c0_i32_0 = arith.constant 0 : i32
    %c0_i32_1 = arith.constant 0 : i32
    return %arg0, %arg1, %c0_i32, %c0_i32_0 : i32, i32, i32, i32
  }
  func.func @transform_1(%arg0: i32, %arg1: i32) -> (i32, i32, i32, i32) {
    %c8_i32 = arith.constant 8 : i32
    %0 = arith.muli %arg1, %c8_i32 : i32
    %c1_i32 = arith.constant 1 : i32
    %1 = arith.subi %0, %c1_i32 : i32
    %c0_i32 = arith.constant 0 : i32
    %2 = arith.maxsi %1, %c0_i32 : i32
    %c0_i32_0 = arith.constant 0 : i32
    %c0_i32_1 = arith.constant 0 : i32
    %c0_i32_2 = arith.constant 0 : i32
    return %arg0, %2, %c0_i32_0, %c0_i32_1 : i32, i32, i32, i32
  }
  func.func @transform_2(%arg0: i32, %arg1: i32) -> (i32, i32, i32, i32) {
    %c8_i32 = arith.constant 8 : i32
    %0 = arith.muli %arg1, %c8_i32 : i32
    %c8_i32_0 = arith.constant 8 : i32
    %1 = arith.addi %0, %c8_i32_0 : i32
    %c15_i32 = arith.constant 15 : i32
    %2 = arith.minsi %1, %c15_i32 : i32
    %c0_i32 = arith.constant 0 : i32
    %c0_i32_1 = arith.constant 0 : i32
    %c0_i32_2 = arith.constant 0 : i32
    return %arg0, %2, %c0_i32, %c0_i32_1 : i32, i32, i32, i32
  }
  func.func @transform_3(%arg0: i32, %arg1: i32) -> (i32, i32, i32) {
    %c0_i32 = arith.constant 0 : i32
    %c0_i32_0 = arith.constant 0 : i32
    %c0_i32_1 = arith.constant 0 : i32
    %c0_i32_2 = arith.constant 0 : i32
    return %c0_i32, %c0_i32_0, %c0_i32_1 : i32, i32, i32
  }
  func.func @transform_4(%arg0: i32, %arg1: i32) -> (i32, i32) {
    %c0_i32 = arith.constant 0 : i32
    %c0_i32_0 = arith.constant 0 : i32
    %c0_i32_1 = arith.constant 0 : i32
    return %c0_i32, %c0_i32_0 : i32, i32
  }
  func.func @transform_5(%arg0: i32, %arg1: i32) -> (i32, i32, i32, i32, i32) {
    %c0_i32 = arith.constant 0 : i32
    %c0_i32_0 = arith.constant 0 : i32
    %c0_i32_1 = arith.constant 0 : i32
    %c0_i32_2 = arith.constant 0 : i32
    return %arg0, %arg1, %c0_i32, %c0_i32_0, %c0_i32_1 : i32, i32, i32, i32, i32
  }
}

</mosaic_0001>

<bundles_post_ra>
// kernel: upsample_conv_transpose.1
= control target key start
LH: loop header
LB: loop body
LE: loop exit
PB: predicated region body
PF: predicated region fallthrough
CT: control target
= control target key end

     0   :  { %s2436_s18 = smov 0   ;;  %s2438_s19 = smov 0   ;;  %s3382_s0 = inlined_call_operand.vmem [shape: f32[2,16,16,4], index: 0, kind: input, shape index: {}, may-alias: {0,1,2}]   ;;  %s3383_s1 = inlined_call_operand.vmem [shape: f32[2,16,16,4], index: 1, kind: input, shape index: {}, may-alias: {0,1,2}]   ;;  %s3384_s2 = inlined_call_operand.vmem [shape: f32[2,16,16,4], index: 2, kind: input, shape index: {}, may-alias: {0,1,2}]   ;;  %s3385_s3 = inlined_call_operand.vmem [shape: f32[2,24,8], index: 3, kind: input, shape index: {}]   ;;  %s3386_s4 = inlined_call_operand.vmem [shape: f32[1,8], index: 4, kind: input, shape index: {}]   ;;  %s3387_s5 = inlined_call_operand.vmem [shape: f32[2,16,2,16,8], index: 5, kind: output, shape index: {}]  }
   0x1   :  { %3388 = sst [smem:[#allocation4_spill]] %s3382_s0  ;;  %s2440_s20 = smov 0  }
   0x2   :  { %s2442_s21 = smov 0   ;;  %s2444_s22 = smov 0  }
   0x3 LB: > { %s24_s23 = sadd.s32 1, %s2388_s20  ;;  %s27_s24 = sadd.s32 1, %s2392_s21  ;;  %s2396_s22 = sphi %s2444_s22, %s15_s22   ;;  %s2392_s21 = sphi %s2442_s21, %s3394_s21   ;;  %s2388_s20 = sphi %s2440_s20, %s3393_s20   ;;  %s2384_s19 = sphi %s2438_s19, %s3392_s19   ;;  %s2380_s18 = sphi %s2436_s18, %s3391_s18  }
   0x4   : > { %p25_p0 = scmp.ge.s32.totalorder %s24_s23, 2  ;;  %p2126_p1 = scmp.ge.s32.totalorder %s2396_s22, 1 }
   0x5   : > { %p273_p2 = scmp.lt.s32.totalorder %s2396_s22, 5 }
   0x6   : > { %s3396_s23 = smov (%p25_p0, %s24_s23), 0  ;;  %s3398_s24 = smov (!%p25_p0, %s27_s24), %s2392_s21 }
   0x7   : > { %p274_p3 = pnand %p2126_p1, %p273_p2  ;;  %p29_p4 = scmp.ge.s32.totalorder %s3398_s24, 2 }
   0x8   : > { %s2471_s25 = sshll.u32 (!%p274_p3), %s2380_s18, 3  ;;  %p338_p5 = scmp.lt.s32.totalorder (!%p274_p3), %s2384_s19, 1 }
   0x9   : > { %s3400_s24 = smov (%p29_p4, %s3398_s24), 0  ;;  %277 = sbr.rel (%p274_p3) target bundleno = 702 (0x2be), region = 40 }
   0xa   : > { %p340_p6 = scmp.lt.s32.totalorder (!%p274_p3), %s2471_s25, 15  ;;  %s2132_s26 = sadd.s32 (!%p274_p3), 4294967295, %s2471_s25 }
   0xb   : > { %p350_p7 = scmp.gt.s32.totalorder (!%p274_p3), %s2132_s26, 0  ;;  %p2133_p8 = scmp.lt.s32.totalorder (!%p274_p3), %s2132_s26, 15 }
   0xc   : > { %s366_s6 = sadd.s32 (!%p274_p3), 8, %s2471_s25  ;;  %s3390_s0 = sld [smem:[#allocation4_spill]] (!%p274_p3) }
   0xd   : > { %p2510_p9 = scmp.lt.s32.totalorder (!%p274_p3), %s366_s6, 15  ;;  %p2152_p10 = scmp.ne.s32.totalorder (!%p274_p3), %s2380_s18, 0 }
   0xe   : > { %vm393_vm0 = vcmask 24576   ;;  %v2398_v0 = vmov 0.0   ;;  %s3402_s19 = smov (!%p338_p5, %s2384_s19), 1  ;;  %vm431_vm1 = vcmask 31744  }
   0xf   : > { %394 = vst.msk [vmem:[#allocation2] sm:$0x1] %vm393_vm0, %v2398_v0  ;;  %395 = vst.msk [vmem:[#allocation2 + $0x18] sm:$0x1] %vm393_vm0, %v2398_v0  ;;  %s2502_s27 = scalar_select %p340_p6, %s2471_s25, 15 }
  0x10   : > { %396 = vst.msk [vmem:[#allocation2 + $0x30] sm:$0x1] %vm393_vm0, %v2398_v0  ;;  %397 = vst.msk [vmem:[#allocation2 + $0x48] sm:$0x1] %vm393_vm0, %v2398_v0  ;;  %s2505_s28 = sshll.u32 %s3402_s19, 5  ;;  %s3404_s6 = smov (!%p2510_p9, %s366_s6), 15 }
  0x11   : > { %398 = vst.msk [vmem:[#allocation2 + $0x60] sm:$0x1] %vm393_vm0, %v2398_v0  ;;  %399 = vst.msk [vmem:[#allocation2 + $0x78] sm:$0x1] %vm393_vm0, %v2398_v0  ;;  %s2128_s29 = sshll.u32 %s2502_s27, 1  ;;  %s2149_s12 = sshll.u32 %s2502_s27, 2 }
  0x12   : > { %400 = vst.msk [vmem:[#allocation2 + $0x90] sm:$0x1] %vm393_vm0, %v2398_v0  ;;  %401 = vst.msk [vmem:[#allocation2 + $0xa8] sm:$0x1] %vm393_vm0, %v2398_v0  ;;  %s344_s30 = sadd.s32 %s2505_s28, %s2128_s29  ;;  %s3408_s6 = smov (!%p2510_p9, %s3404_s6), 15 }
  0x13   : > { %402 = vst.msk [vmem:[#allocation2 + $0xc0] sm:$0x1] %vm393_vm0, %v2398_v0  ;;  %403 = vst.msk [vmem:[#allocation2 + $0xd8] sm:$0x1] %vm393_vm0, %v2398_v0  ;;  %s2130_s7 = sshll.u32 %s344_s30, 3  ;;  %s2150_s15 = sshll.u32 %s3402_s19, 6 }
  0x14   : > { %404 = vst.msk [vmem:[#allocation2 + $0x11] sm:$0x1] %vm393_vm0, %v2398_v0  ;;  %405 = vst.msk [vmem:[#allocation2 + $0x29] sm:$0x1] %vm393_vm0, %v2398_v0  ;;  %s2517_s11 = scalar_lea.vmem %s3390_s0, %s2130_s7  ;;  %s2145_s17 = sshll.u32 %s3408_s6, 1 }
  0x15   : > { %406 = vst.msk [vmem:[#allocation2 + $0x41] sm:$0x1] %vm393_vm0, %v2398_v0  ;;  %407 = vst.msk [vmem:[#allocation2 + $0x59] sm:$0x1] %vm393_vm0, %v2398_v0  ;;  %s351_s13 = scalar_select %p350_p7, %s2132_s26, 0  ;;  %v414_v1 = vld [vmem:[%s2517_s11] sm:$0xff] }
  0x16   : > { %408 = vst.msk [vmem:[#allocation2 + $0x71] sm:$0x1] %vm393_vm0, %v2398_v0  ;;  %409 = vst.msk [vmem:[#allocation2 + $0x89] sm:$0x1] %vm393_vm0, %v2398_v0  ;;  %v415_v2 = vld [vmem:[%s2517_s11 + $0x8] sm:$0xff]  ;;  %v416_v3 = vld [vmem:[%s2517_s11 + $0x10] sm:$0xff]  ;;  %s375_s25 = sadd.s32 %s2145_s17, %s2505_s28  ;;  %s389_s10 = sadd.s32 %s2150_s15, %s2149_s12 }
  0x17   : > { %410 = vst.msk [vmem:[#allocation2 + $0xa1] sm:$0x1] %vm393_vm0, %v2398_v0  ;;  %411 = vst.msk [vmem:[#allocation2 + $0xb9] sm:$0x1] %vm393_vm0, %v2398_v0  ;;  %v417_v4 = vld [vmem:[%s2517_s11 + $0x18] sm:$0xff]  ;;  %v418_v5 = vld [vmem:[%s2517_s11 + $0x20] sm:$0xff] }
  0x18   : > { %412 = vst.msk [vmem:[#allocation2 + $0xd1] sm:$0x1] %vm393_vm0, %v2398_v0  ;;  %413 = vst.msk [vmem:[#allocation2 + $0xe9] sm:$0x1] %vm393_vm0, %v2398_v0  ;;  %v419_v6 = vld [vmem:[%s2517_s11 + $0x28] sm:$0xff]  ;;  %s3406_s13 = smov (!%p2133_p8, %s351_s13), 15 }
  0x19   : > { %432 = vst.msk [vmem:[#allocation2 + $0x19] sm:$0xff] %vm431_vm1, %v414_v1  ;;  %433 = vst.msk [vmem:[#allocation2 + $0x21] sm:$0xff] %vm431_vm1, %v415_v2  ;;  %v420_v7 = vld [vmem:[%s2517_s11 + $0x30] sm:$0xff]  ;;  %v421_v8 = vld [vmem:[%s2517_s11 + $0x38] sm:$0xff]  ;;  %s2138_s14 = sshll.u32 %s3406_s13, 1  ;;  %s2147_s7 = sshll.u32 %s375_s25, 3 }
  0x1a   : > { %434 = vst.msk [vmem:[#allocation2 + $0x31] sm:$0xff] %vm431_vm1, %v416_v3  ;;  %435 = vst.msk [vmem:[#allocation2 + $0x39] sm:$0xff] %vm431_vm1, %v417_v4  ;;  %v422_v9 = vld [vmem:[%s2517_s11 + $0x40] sm:$0xff]  ;;  %v423_v10 = vld [vmem:[%s2517_s11 + $0x48] sm:$0xff]  ;;  %s358_s16 = sadd.s32 %s2138_s14, %s2505_s28  ;;  %s377_s6 = scalar_lea.vmem %s3384_s2, %s2147_s7 }
  0x1b   : > { %436 = vst.msk [vmem:[#allocation2 + $0x49] sm:$0xff] %vm431_vm1, %v418_v5  ;;  %437 = vst.msk [vmem:[#allocation2 + $0x51] sm:$0xff] %vm431_vm1, %v419_v6  ;;  %v424_v11 = vld [vmem:[%s2517_s11 + $0x50] sm:$0xff]  ;;  %v425_v12 = vld [vmem:[%s2517_s11 + $0x58] sm:$0xff]  ;;  %s2140_s19 = sshll.u32 %s358_s16, 3  ;;  %s2151_s13 = sshll.u32 %s389_s10, 3 }
  0x1c   : > { %438 = vst.msk [vmem:[#allocation2 + $0x61] sm:$0xff] %vm431_vm1, %v420_v7  ;;  %439 = vst.msk [vmem:[#allocation2 + $0x69] sm:$0xff] %vm431_vm1, %v421_v8  ;;  %v426_v13 = vld [vmem:[%s2517_s11 + $0x60] sm:$0xff]  ;;  %v427_v14 = vld [vmem:[%s2517_s11 + $0x68] sm:$0xff]  ;;  %s360_s30 = scalar_lea.vmem %s3383_s1, %s2140_s19  ;;  %451 = sbr.rel (%p2152_p10) target bundleno = 35 (0x23), region = 44 }
  0x1d   : > { %440 = vst.msk [vmem:[#allocation2 + $0x79] sm:$0xff] %vm431_vm1, %v422_v9  ;;  %441 = vst.msk [vmem:[#allocation2 + $0x81] sm:$0xff] %vm431_vm1, %v423_v10  ;;  %v428_v15 = vld [vmem:[%s2517_s11 + $0x70] sm:$0xff]  ;;  %v429_v16 = vld [vmem:[%s2517_s11 + $0x78] sm:$0xff]  ;;  %s2574_s11 = scalar_lea.vmem %s3387_s5, %s2151_s13 }
  0x1e   : > { %442 = vst.msk [vmem:[#allocation2 + $0x91] sm:$0xff] %vm431_vm1, %v424_v11  ;;  %443 = vst.msk [vmem:[#allocation2 + $0x99] sm:$0xff] %vm431_vm1, %v425_v12 }
  0x1f   : > { %444 = vst.msk [vmem:[#allocation2 + $0xa9] sm:$0xff] %vm431_vm1, %v426_v13  ;;  %445 = vst.msk [vmem:[#allocation2 + $0xb1] sm:$0xff] %vm431_vm1, %v427_v14 }
  0x20   : > { %446 = vst.msk [vmem:[#allocation2 + $0xc1] sm:$0xff] %vm431_vm1, %v428_v15  ;;  %447 = vst.msk [vmem:[#allocation2 + $0xc9] sm:$0xff] %vm431_vm1, %v429_v16 }
  0x21   : > { %v2399_v17 = vmov 0.0  }
  0x22   : > { %452 = vst.msk [vmem:[#allocation2 + $0x1] sm:$0xff] %vm431_vm1, %v2399_v17  ;;  %453 = vst.msk [vmem:[#allocation2 + $0x9] sm:$0xff] %vm431_vm1, %v2399_v17 }
  0x23 PF: > { %p2153_p11 = scmp.le.s32.totalorder %s2380_s18, 0 }
  0x25   : > { %457 = sbr.rel (%p2153_p11) target bundleno = 44 (0x2c), region = 48 }
  0x2a   : > { %v458_v18 = vld [vmem:[%s360_s30] sm:$0xff]  ;;  %v459_v19 = vld [vmem:[%s360_s30 + $0x8] sm:$0xff] }
  0x2b   : > { %460 = vst.msk [vmem:[#allocation2 + $0x1] sm:$0xff] %vm431_vm1, %v458_v18  ;;  %461 = vst.msk [vmem:[#allocation2 + $0x9] sm:$0xff] %vm431_vm1, %v459_v19 }
  0x2c PF: > { %p2154_p12 = scmp.ne.s32.totalorder %s2380_s18, 1 }
  0x2e   : > { %465 = sbr.rel (%p2154_p12) target bundleno = 53 (0x35), region = 52 }
  0x33   : > { %v2400_v20 = vmov 0.0  }
  0x34   : > { %467 = vst.msk [vmem:[#allocation2 + $0xd9] sm:$0xff] %vm431_vm1, %v2400_v20  ;;  %468 = vst.msk [vmem:[#allocation2 + $0xe1] sm:$0xff] %vm431_vm1, %v2400_v20 }
  0x35 PF: > { %p2155_p13 = scmp.ge.s32.totalorder %s2380_s18, 1 }
  0x37   : > { %472 = sbr.rel (%p2155_p13) target bundleno = 62 (0x3e), region = 56 }
  0x3c   : > { %v473_v21 = vld [vmem:[%s377_s6] sm:$0xff]  ;;  %v474_v22 = vld [vmem:[%s377_s6 + $0x8] sm:$0xff] }
  0x3d   : > { %476 = vst.msk [vmem:[#allocation2 + $0xd9] sm:$0xff] %vm431_vm1, %v473_v21  ;;  %477 = vst.msk [vmem:[#allocation2 + $0xe1] sm:$0xff] %vm431_vm1, %v474_v22 }
  0x3e PF: > { %v2588_v23 = vld [vmem:[#allocation2 + $0x18] sm:$0xff]  ;;  %v511_v24 = vld [vmem:[#allocation2] sm:$0xff]  ;;  %s2401_s0 = smov 4   ;;  %v2597_v27 = vld [vmem:[#allocation2 + $0x30] sm:$0xff]  ;;  %s2402_s18 = smov 8   ;;  %vm591_vm2 = vcmask 64544  }
  0x3f   : > { %v2590_v25 = vld [vmem:[#allocation2 + $0x20] sm:$0xff]  ;;  %547 = vrot.lane.b32.xlu1 %v2588_v23, %s2401_s0  ;;  %543 = vrot.lane.b32.xlu0 %v511_v24, %s2401_s0  ;;  %v2595_v26 = vld [vmem:[#allocation2 + $0x38] sm:$0xff]  ;;  %495 = vst.msk [vmem:[#allocation3] sm:$0xff] %vm431_vm1, %v2588_v23  ;;  %v512_v28 = vld [vmem:[#allocation2 + $0x8] sm:$0xff]  ;;  %s2403_s27 = smov 12   ;;  %s2404_s17 = smov 16  }
  0x40   : > { %496 = vst.msk [vmem:[#allocation3 + $0x8] sm:$0xff] %vm431_vm1, %v2590_v25  ;;  %497 = vst.msk [vmem:[#allocation3 + $0x10] sm:$0xff] %vm431_vm1, %v2597_v27  ;;  %v2610_v29 = vld [vmem:[#allocation2 + $0x48] sm:$0xff]  ;;  %v2614_v30 = vld [vmem:[#allocation2 + $0x50] sm:$0xff]  ;;  %s2405_s26 = smov 20   ;;  %vm688_vm3 = vcmask 97344  }
  0x41   : > { %498 = vst.msk [vmem:[#allocation3 + $0x18] sm:$0xff] %vm431_vm1, %v2595_v26  ;;  %499 = vst.msk [vmem:[#allocation3 + $0x20] sm:$0xff] %vm431_vm1, %v2610_v29  ;;  %v2620_v31 = vld [vmem:[#allocation2 + $0x60] sm:$0xff]  ;;  %v2622_v32 = vld [vmem:[#allocation2 + $0x68] sm:$0xff]  ;;  %vm785_vm4 = vcmask 130144   ;;  %vm882_vm5 = vcmask 162944  }
  0x42   : > { %500 = vst.msk [vmem:[#allocation3 + $0x28] sm:$0xff] %vm431_vm1, %v2614_v30  ;;  %v2626_v33 = vld [vmem:[#allocation2 + $0x21] sm:$0xff]  ;;  %v2628_v34 = vld [vmem:[#allocation2 + $0x19] sm:$0xff]  ;;  %501 = vst.msk [vmem:[#allocation3 + $0x30] sm:$0xff] %vm431_vm1, %v2620_v31  ;;  %vm979_vm6 = vcmask 195744   ;;  %vm1021_vm7 = vcmask 195584  }
  0x43   : > { %549 = vrot.lane.b32.xlu1 %v2590_v25, %s2401_s0  ;;  %545 = vrot.lane.b32.xlu0 %v512_v28, %s2401_s0  ;;  %502 = vst.msk [vmem:[#allocation3 + $0x38] sm:$0xff] %vm431_vm1, %v2622_v32  ;;  %v2634_v35 = vld [vmem:[#allocation2 + $0x78] sm:$0xff]  ;;  %v2636_v36 = vld [vmem:[#allocation2 + $0x80] sm:$0xff]  ;;  %v706_v37 = vld [vmem:[#allocation2 + $0x9] sm:$0xff]  ;;  %vm1215_vm8 = vcmask 64512  }
  0x44   : > { %503 = vst.msk [vmem:[#allocation3 + $0x40] sm:$0xff] %vm431_vm1, %v2634_v35  ;;  %504 = vst.msk [vmem:[#allocation3 + $0x48] sm:$0xff] %vm431_vm1, %v2636_v36  ;;  %v705_v38 = vld [vmem:[#allocation2 + $0x1] sm:$0xff]  ;;  %v1014_v39 = vld [vmem:[%s3385_s3 + $0x10] sm:$0xff] }
  0x45   : > { %v2651_v40 = vld [vmem:[#allocation2 + $0x22] sm:$0xff]  ;;  %v2653_v41 = vld [vmem:[#allocation2 + $0x1a] sm:$0xff]  ;;  %2250 = vmatprep.subr.mxu0 %v1014_v39  ;;  %v2665_v44 = vld [vmem:[#allocation2 + $0x31] sm:$0xff] }
  0x46   : > { %2251 = vmatpush3.msra.mxu0 %v1014_v39  ;;  %v1013_v42 = vld [vmem:[%s3385_s3 + $0x8] sm:$0xff]  ;;  %v1012_v43 = vld [vmem:[%s3385_s3] sm:$0xff]  ;;  %v2681_v49 = vld [vmem:[#allocation2 + $0x32] sm:$0xff] }
  0x47   : > { %553 = vrot.lane.b32.xlu1 %v2595_v26, %s2401_s0  ;;  %551 = vrot.lane.b32.xlu0 %v2597_v27, %s2401_s0  ;;  %v899_v45 = vld [vmem:[#allocation2 + $0x2] sm:$0xff]  ;;  %v2670_v46 = vld [vmem:[#allocation2 + $0x39] sm:$0xff]  ;;  %v900_v47 = vld [vmem:[#allocation2 + $0xa] sm:$0xff] }
  0x48   : > { %2252 = vmatprep.subr.mxu0 %v1013_v42  ;;  %v2679_v48 = vld [vmem:[#allocation2 + $0x3a] sm:$0xff]  ;;  %v2683_v50 = vld [vmem:[#allocation2 + $0x90] sm:$0xff]  ;;  %v2743_v58 = vld [vmem:[#allocation2 + $0x62] sm:$0xff] }
  0x49   : > { %2253 = vmatpush3.msra.mxu0 %v1013_v42  ;;  %505 = vst.msk [vmem:[#allocation3 + $0x50] sm:$0xff] %vm431_vm1, %v2683_v50  ;;  %v2691_v51 = vld [vmem:[#allocation2 + $0x49] sm:$0xff]  ;;  %v2697_v52 = vld [vmem:[#allocation2 + $0x51] sm:$0xff]  ;;  %v2723_v56 = vld [vmem:[#allocation2 + $0x61] sm:$0xff] }
  0x4a   : > { %2254 = vmatprep.subr.mxu0 %v1012_v43  ;;  %v2699_v53 = vld [vmem:[#allocation2 + $0x98] sm:$0xff]  ;;  %v2711_v54 = vld [vmem:[#allocation2 + $0x4a] sm:$0xff]  ;;  %v2788_v0 = vld [vmem:[#allocation2 + $0x81] sm:$0xff] }
  0x4b   : > { %642 = vrot.lane.b32.xlu1 %v2626_v33, %s2402_s18  ;;  %640 = vrot.lane.b32.xlu0 %v2628_v34, %s2402_s18  ;;  %506 = vst.msk [vmem:[#allocation3 + $0x58] sm:$0xff] %vm431_vm1, %v2699_v53  ;;  %v2717_v55 = vld [vmem:[#allocation2 + $0x52] sm:$0xff]  ;;  %v2733_v57 = vld [vmem:[#allocation2 + $0x69] sm:$0xff]  ;;  %v2174_v1 = vld [vmem:[%s3385_s3 + $0x20] sm:$0xff] }
  0x4c   : > { %2255 = vmatpush3.msra.mxu0 %v1012_v43  ;;  %v2745_v59 = vld [vmem:[#allocation2 + $0xa8] sm:$0xff]  ;;  %v2759_v61 = vld [vmem:[#allocation2 + $0xb0] sm:$0xff]  ;;  %v2775_v62 = vld [vmem:[#allocation2 + $0x79] sm:$0xff] }
  0x4d   : > { %507 = vst.msk [vmem:[#allocation3 + $0x60] sm:$0xff] %vm431_vm1, %v2745_v59  ;;  %v2757_v60 = vld [vmem:[#allocation2 + $0x6a] sm:$0xff]  ;;  %508 = vst.msk [vmem:[#allocation3 + $0x68] sm:$0xff] %vm431_vm1, %v2759_v61  ;;  %v2173_v2 = vld [vmem:[%s3385_s3 + $0x18] sm:$0xff] }
  0x4e   : > { %v2175_v63 = vld [vmem:[%s3385_s3 + $0x28] sm:$0xff]  ;;  %v2808_v3 = vld [vmem:[#allocation2 + $0x7a] sm:$0xff]  ;;  %v2842_v15 = vld [vmem:[#allocation2 + $0x91] sm:$0xff] }
  0x4f   : > { %739 = vrot.lane.b32.xlu1 %v706_v37, %s2403_s27  ;;  %737 = vrot.lane.b32.xlu0 %v705_v38, %s2403_s27  ;;  %v2822_v8 = vld [vmem:[#allocation2 + $0x82] sm:$0xff]  ;;  %v2856_v20 = vld [vmem:[#allocation2 + $0x99] sm:$0xff] }
  0x50   : > { %2280 = vmatprep.subr.mxu1 %v2175_v63 }
  0x51   : > { %2281 = vmatpush3.msra.mxu1 %v2175_v63 }
  0x52   : > { %2282 = vmatprep.subr.mxu1 %v2174_v1 }
  0x53   : > { %836 = vrot.lane.b32.xlu1 %v2651_v40, %s2404_s17  ;;  %834 = vrot.lane.b32.xlu0 %v2653_v41, %s2404_s17 }
  0x54   : > { %2283 = vmatpush3.msra.mxu1 %v2174_v1 }
  0x55   : > { %2284 = vmatprep.subr.mxu1 %v2173_v2 }
  0x56   : > { %2285 = vmatpush3.msra.mxu1 %v2173_v2 }
  0x57   : > { %644 = vrot.lane.b32.xlu1 %v2665_v44, %s2402_s18  ;;  %931 = vrot.lane.b32.xlu0 %v899_v45, %s2405_s26 }
  0x5b   : > { %646 = vrot.lane.b32.xlu1 %v2670_v46, %s2402_s18  ;;  %933 = vrot.lane.b32.xlu0 %v900_v47, %s2405_s26 }
  0x5f   : > { %743 = vrot.lane.b32.xlu1 %v2626_v33, %s2403_s27  ;;  %741 = vrot.lane.b32.xlu0 %v2628_v34, %s2403_s27 }
  0x63   : > { %840 = vrot.lane.b32.xlu1 %v2679_v48, %s2404_s17  ;;  %838 = vrot.lane.b32.xlu0 %v2681_v49, %s2404_s17 }
  0x67   : > { %648 = vrot.lane.b32.xlu1 %v2691_v51, %s2402_s18  ;;  %935 = vrot.lane.b32.xlu0 %v2653_v41, %s2405_s26 }
  0x6b   : > { %650 = vrot.lane.b32.xlu1 %v2697_v52, %s2402_s18  ;;  %937 = vrot.lane.b32.xlu0 %v2651_v40, %s2405_s26 }
  0x6f   : > { %747 = vrot.lane.b32.xlu1 %v2670_v46, %s2403_s27  ;;  %745 = vrot.lane.b32.xlu0 %v2665_v44, %s2403_s27 }
  0x73   : > { %555 = vrot.lane.b32.xlu1 %v2610_v29, %s2401_s0  ;;  %842 = vrot.lane.b32.xlu0 %v2711_v54, %s2404_s17 }
  0x77   : > { %939 = vrot.lane.b32.xlu1 %v2681_v49, %s2405_s26  ;;  %844 = vrot.lane.b32.xlu0 %v2717_v55, %s2404_s17 }
  0x7b   : > { %652 = vrot.lane.b32.xlu1 %v2723_v56, %s2402_s18  ;;  %557 = vrot.lane.b32.xlu0 %v2614_v30, %s2401_s0 }
  0x7f   : > { %1297 = vrot.lane.b32.xlu1 %v2588_v23, %s2401_s0  ;;  %941 = vrot.lane.b32.xlu0 %v2679_v48, %s2405_s26 }
  0x83   : > { %749 = vrot.lane.b32.xlu1 %v2691_v51, %s2403_s27  ;;  %654 = vrot.lane.b32.xlu0 %v2733_v57, %s2402_s18 }
  0x87   : > { %1393 = vrot.lane.b32.xlu1 %v2665_v44, %s2402_s18  ;;  %1299 = vrot.lane.b32.xlu0 %v2590_v25, %s2401_s0 }
  0x8b   : > { %846 = vrot.lane.b32.xlu1 %v2743_v58, %s2404_s17  ;;  %751 = vrot.lane.b32.xlu0 %v2697_v52, %s2403_s27 }
  0x8f   : > { %1489 = vrot.lane.b32.xlu1 %v2628_v34, %s2403_s27  ;;  %1395 = vrot.lane.b32.xlu0 %v2670_v46, %s2402_s18 }
  0x93   : > { %848 = vrot.lane.b32.xlu1 %v2757_v60, %s2404_s17  ;;  %559 = vrot.lane.b32.xlu0 %v2620_v31, %s2401_s0 }
  0x97   : > { %1491 = vrot.lane.b32.xlu1 %v2626_v33, %s2403_s27  ;;  %943 = vrot.lane.b32.xlu0 %v2711_v54, %s2405_s26 }
  0x9b   : > { %561 = vrot.lane.b32.xlu1 %v2622_v32, %s2401_s0  ;;  %1585 = vrot.lane.b32.xlu0 %v2681_v49, %s2404_s17 }
  0x9f   : > { %945 = vrot.lane.b32.xlu1 %v2717_v55, %s2405_s26  ;;  %656 = vrot.lane.b32.xlu0 %v2775_v62, %s2402_s18 }
  0xa3   : > { %1587 = vrot.lane.b32.xlu1 %v2679_v48, %s2404_s17  ;;  %1301 = vrot.lane.b32.xlu0 %v2597_v27, %s2401_s0 }
  0xa7   : > { %658 = vrot.lane.b32.xlu1 %v2788_v0, %s2402_s18  ;;  %1681 = vrot.lane.b32.xlu0 %v2653_v41, %s2405_s26 }
  0xab   : > { %1303 = vrot.lane.b32.xlu1 %v2595_v26, %s2401_s0  ;;  %753 = vrot.lane.b32.xlu0 %v2723_v56, %s2403_s27 }
  0xaf   : > { %1683 = vrot.lane.b32.xlu1 %v2651_v40, %s2405_s26  ;;  %1397 = vrot.lane.b32.xlu0 %v2691_v51, %s2402_s18  ;;  %v2896_v40 = vld [vmem:[#allocation2 + $0x9a] sm:$0xff] }
  0xb1   : > { %v548_v4 = vpop.permute.xlu1 %547  ;;  %v544_v5 = vpop.permute.xlu0 %543 }
  0xb2   : > { %594 = vst.msk [vmem:[#allocation3 + $0x10] sm:$0xff] %vm591_vm2, %v548_v4  ;;  %592 = vst.msk [vmem:[#allocation3] sm:$0xff] %vm591_vm2, %v544_v5  ;;  %v2947_v4 = vld [vmem:[#allocation2 + $0xb1] sm:$0xff] }
  0xb3   : > { %850 = vrot.lane.b32.xlu1 %v2808_v3, %s2404_s17  ;;  %755 = vrot.lane.b32.xlu0 %v2733_v57, %s2403_s27 }
  0xb5   : > { %v550_v6 = vpop.permute.xlu1 %549  ;;  %v546_v7 = vpop.permute.xlu0 %545 }
  0xb6   : > { %595 = vst.msk [vmem:[#allocation3 + $0x18] sm:$0xff] %vm591_vm2, %v550_v6  ;;  %593 = vst.msk [vmem:[#allocation3 + $0x8] sm:$0xff] %vm591_vm2, %v546_v7 }
  0xb7   : > { %1493 = vrot.lane.b32.xlu1 %v2665_v44, %s2403_s27  ;;  %1399 = vrot.lane.b32.xlu0 %v2697_v52, %s2402_s18  ;;  %v2907_v44 = vld [vmem:[#allocation2 + $0xc0] sm:$0xff] }
  0xb8   : > { %509 = vst.msk [vmem:[#allocation3 + $0x70] sm:$0xff] %vm431_vm1, %v2907_v44 }
  0xb9   : > { %v554_v9 = vpop.permute.xlu1 %553  ;;  %v552_v10 = vpop.permute.xlu0 %551 }
  0xba   : > { %597 = vst.msk [vmem:[#allocation3 + $0x28] sm:$0xff] %vm591_vm2, %v554_v9  ;;  %596 = vst.msk [vmem:[#allocation3 + $0x20] sm:$0xff] %vm591_vm2, %v552_v10 }
  0xbb   : > { %852 = vrot.lane.b32.xlu1 %v2822_v8, %s2404_s17  ;;  %563 = vrot.lane.b32.xlu0 %v2634_v35, %s2401_s0 }
  0xbd   : > { %v643_v11 = vpop.permute.xlu1 %642  ;;  %v641_v12 = vpop.permute.xlu0 %640 }
  0xbe   : > { %690 = vst.msk [vmem:[#allocation3 + $0x8] sm:$0xff] %vm688_vm3, %v643_v11  ;;  %689 = vst.msk [vmem:[#allocation3] sm:$0xff] %vm688_vm3, %v641_v12  ;;  %v2970_v11 = vld [vmem:[#allocation2 + $0xaa] sm:$0xff] }
  0xbf   : > { %1495 = vrot.lane.b32.xlu1 %v2670_v46, %s2403_s27  ;;  %947 = vrot.lane.b32.xlu0 %v2743_v58, %s2405_s26 }
  0xc1   : > { %v740_v13 = vpop.permute.xlu1 %739  ;;  %v738_v14 = vpop.permute.xlu0 %737 }
  0xc2   : > { %787 = vst.msk [vmem:[#allocation3 + $0x8] sm:$0xff] %vm785_vm4, %v740_v13  ;;  %786 = vst.msk [vmem:[#allocation3] sm:$0xff] %vm785_vm4, %v738_v14 }
  0xc3   : > { %565 = vrot.lane.b32.xlu1 %v2636_v36, %s2401_s0  ;;  %1589 = vrot.lane.b32.xlu0 %v2711_v54, %s2404_s17 }
  0xc5   : > { %v837_v16 = vpop.permute.xlu1 %836  ;;  %v835_v17 = vpop.permute.xlu0 %834 }
  0xc6   : > { %884 = vst.msk [vmem:[#allocation3 + $0x8] sm:$0xff] %vm882_vm5, %v837_v16  ;;  %883 = vst.msk [vmem:[#allocation3] sm:$0xff] %vm882_vm5, %v835_v17 }
  0xc7   : > { %949 = vrot.lane.b32.xlu1 %v2757_v60, %s2405_s26  ;;  %660 = vrot.lane.b32.xlu0 %v2842_v15, %s2402_s18 }
  0xc9   : > { %v645_v18 = vpop.permute.xlu1 %644  ;;  %v932_v19 = vpop.permute.xlu0 %931 }
  0xca   : > { %691 = vst.msk [vmem:[#allocation3 + $0x10] sm:$0xff] %vm688_vm3, %v645_v18 }
  0xcb   : > { %980 = vst.msk [vmem:[#allocation3] sm:$0xff] %vm979_vm6, %v932_v19  ;;  %1591 = vrot.lane.b32.xlu1 %v2717_v55, %s2404_s17  ;;  %1305 = vrot.lane.b32.xlu0 %v2610_v29, %s2401_s0 }
  0xcd   : > { %v647_v21 = vpop.permute.xlu1 %646  ;;  %v934_v22 = vpop.permute.xlu0 %933 }
  0xce   : > { %692 = vst.msk [vmem:[#allocation3 + $0x18] sm:$0xff] %vm688_vm3, %v647_v21 }
  0xcf   : > { %981 = vst.msk [vmem:[#allocation3 + $0x8] sm:$0xff] %vm979_vm6, %v934_v22  ;;  %662 = vrot.lane.b32.xlu1 %v2856_v20, %s2402_s18  ;;  %1685 = vrot.lane.b32.xlu0 %v2681_v49, %s2405_s26  ;;  %v2922_v49 = vld [vmem:[#allocation2 + $0xc8] sm:$0xff] }
  0xd0   : > { %510 = vst.msk [vmem:[#allocation3 + $0x78] sm:$0xff] %vm431_vm1, %v2922_v49 }
  0xd1   : > { %v744_v23 = vpop.permute.xlu1 %743  ;;  %v742_v24 = vpop.permute.xlu0 %741 }
  0xd2   : > { %v996_v25 = vld [vmem:[#allocation3] sm:$0xff]  ;;  %789 = vst.msk [vmem:[#allocation3 + $0x18] sm:$0xff] %vm785_vm4, %v744_v23  ;;  %788 = vst.msk [vmem:[#allocation3 + $0x10] sm:$0xff] %vm785_vm4, %v742_v24 }
  0xd3   : > { %2256 = vmatprep.mubr.msk.f32.mxu0 %vm1021_vm7, %v996_v25  ;;  %1249 = vst.msk [vmem:[#allocation3] sm:$0xff] %vm431_vm1, %v2597_v27  ;;  %1307 = vrot.lane.b32.xlu1 %v2614_v30, %s2401_s0  ;;  %v2882_v27 = vld [vmem:[#allocation2 + $0x92] sm:$0xff] }
  0xd4   : > { %757 = vrot.lane.b32.xlu0 %v2775_v62, %s2403_s27 }
  0xd5   : > { %v841_v28 = vpop.permute.xlu1 %840  ;;  %v839_v33 = vpop.permute.xlu0 %838 }
  0xd6   : > { %v997_v34 = vld [vmem:[#allocation3 + $0x8] sm:$0xff]  ;;  %886 = vst.msk [vmem:[#allocation3 + $0x18] sm:$0xff] %vm882_vm5, %v841_v28  ;;  %885 = vst.msk [vmem:[#allocation3 + $0x10] sm:$0xff] %vm882_vm5, %v839_v33 }
  0xd7   : > { %2257 = vmatmul.mubr.msk.f32.vlgmr.msra.gmra.mxu0 %vm1021_vm7, %v997_v34  ;;  %1250 = vst.msk [vmem:[#allocation3 + $0x8] sm:$0xff] %vm431_vm1, %v2595_v26  ;;  %1687 = vrot.lane.b32.xlu1 %v2679_v48, %s2405_s26  ;;  %v3024_v34 = vld [vmem:[#allocation2 + $0xc9] sm:$0xff] }
  0xd8   : > { %1401 = vrot.lane.b32.xlu0 %v2723_v56, %s2402_s18 }
  0xd9   : > { %v649_v37 = vpop.permute.xlu1 %648  ;;  %v936_v38 = vpop.permute.xlu0 %935 }
  0xda   : > { %693 = vst.msk [vmem:[#allocation3 + $0x20] sm:$0xff] %vm688_vm3, %v649_v37 }
  0xdb   : > { %982 = vst.msk [vmem:[#allocation3 + $0x10] sm:$0xff] %vm979_vm6, %v936_v38  ;;  %854 = vrot.lane.b32.xlu1 %v2882_v27, %s2404_s17 }
  0xdc   : > { %759 = vrot.lane.b32.xlu0 %v2788_v0, %s2403_s27 }
  0xdd   : > { %v651_v26 = vpop.permute.xlu1 %650  ;;  %v938_v39 = vpop.permute.xlu0 %937 }
  0xde   : > { %694 = vst.msk [vmem:[#allocation3 + $0x28] sm:$0xff] %vm688_vm3, %v651_v26 }
  0xdf   : > { %983 = vst.msk [vmem:[#allocation3 + $0x18] sm:$0xff] %vm979_vm6, %v938_v39  ;;  %1497 = vrot.lane.b32.xlu1 %v2691_v51, %s2403_s27 }
  0xe0   : > { %1403 = vrot.lane.b32.xlu0 %v2733_v57, %s2402_s18 }
  0xe1   : > { %v748_v41 = vpop.permute.xlu1 %747  ;;  %v746_v42 = vpop.permute.xlu0 %745 }
  0xe2   : > { %v998_v43 = vld [vmem:[#allocation3 + $0x10] sm:$0xff]  ;;  %791 = vst.msk [vmem:[#allocation3 + $0x28] sm:$0xff] %vm785_vm4, %v748_v41  ;;  %790 = vst.msk [vmem:[#allocation3 + $0x20] sm:$0xff] %vm785_vm4, %v746_v42 }
  0xe3   : > { %2259 = vmatprep.mubr.msk.f32.mxu0 %vm1021_vm7, %v998_v43  ;;  %1251 = vst.msk [vmem:[#allocation3 + $0x10] sm:$0xff] %vm431_vm1, %v2610_v29  ;;  %856 = vrot.lane.b32.xlu1 %v2896_v40, %s2404_s17 }
  0xe4   : > { %567 = vrot.lane.b32.xlu0 %v2683_v50, %s2401_s0 }
  0xe5   : > { %v556_v45 = vpop.permute.xlu1 %555  ;;  %v843_v46 = vpop.permute.xlu0 %842 }
  0xe6   : > { %v999_v47 = vld [vmem:[#allocation3 + $0x18] sm:$0xff]  ;;  %598 = vst.msk [vmem:[#allocation3 + $0x30] sm:$0xff] %vm591_vm2, %v556_v45 }
  0xe7   : > { %887 = vst.msk [vmem:[#allocation3 + $0x20] sm:$0xff] %vm882_vm5, %v843_v46  ;;  %2260 = vmatmul.mubr.msk.f32.gmra.mxu0 %vm1021_vm7, %v999_v47  ;;  %1499 = vrot.lane.b32.xlu1 %v2697_v52, %s2403_s27  ;;  %v3060_v47 = vld [vmem:[#allocation2 + $0xca] sm:$0xff] }
  0xe8   : > { %1252 = vst.msk [vmem:[#allocation3 + $0x18] sm:$0xff] %vm431_vm1, %v2614_v30  ;;  %951 = vrot.lane.b32.xlu0 %v2808_v3, %s2405_s26  ;;  %v2930_v30 = vld [vmem:[#allocation2 + $0xa9] sm:$0xff] }
  0xe9   : > { %v940_v29 = vpop.permute.xlu1 %939  ;;  %v845_v48 = vpop.permute.xlu0 %844 }
  0xea   : > { %984 = vst.msk [vmem:[#allocation3 + $0x20] sm:$0xff] %vm979_vm6, %v940_v29 }
  0xeb   : > { %888 = vst.msk [vmem:[#allocation3 + $0x28] sm:$0xff] %vm882_vm5, %v845_v48  ;;  %569 = vrot.lane.b32.xlu1 %v2699_v53, %s2401_s0 }
  0xec   : > { %1593 = vrot.lane.b32.xlu0 %v2743_v58, %s2404_s17 }
  0xed   : > { %v653_v51 = vpop.permute.xlu1 %652  ;;  %v558_v52 = vpop.permute.xlu0 %557 }
  0xee   : > { %695 = vst.msk [vmem:[#allocation3 + $0x30] sm:$0xff] %vm688_vm3, %v653_v51 }
  0xef   : > { %599 = vst.msk [vmem:[#allocation3 + $0x38] sm:$0xff] %vm591_vm2, %v558_v52  ;;  %953 = vrot.lane.b32.xlu1 %v2822_v8, %s2405_s26 }
  0xf0   : > { %664 = vrot.lane.b32.xlu0 %v2930_v30, %s2402_s18 }
  0xf1   : > { %v1298_v63 = vpop.permute.xlu1 %1297  ;;  %v942_v1 = vpop.permute.xlu0 %941  ;;  %v1000_v2 = vld [vmem:[#allocation3 + $0x20] sm:$0xff] }
  0xf2   : > { %1345 = vst.msk [vmem:[#allocation3] sm:$0xff] %vm591_vm2, %v1298_v63  ;;  %2262 = vmatprep.mubr.msk.f32.mxu0 %vm1021_vm7, %v1000_v2 }
  0xf3   : > { %985 = vst.msk [vmem:[#allocation3 + $0x28] sm:$0xff] %vm979_vm6, %v942_v1  ;;  %1595 = vrot.lane.b32.xlu1 %v2757_v60, %s2404_s17 }
  0xf4   : > { %1253 = vst.msk [vmem:[#allocation3 + $0x20] sm:$0xff] %vm431_vm1, %v2620_v31  ;;  %1309 = vrot.lane.b32.xlu0 %v2620_v31, %s2401_s0 }
  0xf5   : > { %v750_v5 = vpop.permute.xlu1 %749  ;;  %v655_v6 = vpop.permute.xlu0 %654 }
  0xf6   : > { %792 = vst.msk [vmem:[#allocation3 + $0x30] sm:$0xff] %vm785_vm4, %v750_v5 }
  0xf7   : > { %696 = vst.msk [vmem:[#allocation3 + $0x38] sm:$0xff] %vm688_vm3, %v655_v6  ;;  %666 = vrot.lane.b32.xlu1 %v2947_v4, %s2402_s18 }
  0xf8   : > { %1689 = vrot.lane.b32.xlu0 %v2711_v54, %s2405_s26 }
  0xf9   : > { %v1394_v7 = vpop.permute.xlu1 %1393  ;;  %v1300_v9 = vpop.permute.xlu0 %1299 }
  0xfa   : > { %v1001_v10 = vld [vmem:[#allocation3 + $0x28] sm:$0xff]  ;;  %1441 = vst.msk [vmem:[#allocation3] sm:$0xff] %vm688_vm3, %v1394_v7 }
  0xfb   : > { %1346 = vst.msk [vmem:[#allocation3 + $0x8] sm:$0xff] %vm591_vm2, %v1300_v9  ;;  %2263 = vmatmul.mubr.msk.f32.gmra.mxu0 %vm1021_vm7, %v1001_v10  ;;  %1311 = vrot.lane.b32.xlu1 %v2622_v32, %s2401_s0 }
  0xfc   : > { %1254 = vst.msk [vmem:[#allocation3 + $0x28] sm:$0xff] %vm431_vm1, %v2622_v32  ;;  %761 = vrot.lane.b32.xlu0 %v2842_v15, %s2403_s27 }
  0xfd   : > { %v847_v31 = vpop.permute.xlu1 %846  ;;  %v752_v54 = vpop.permute.xlu0 %751 }
  0xfe   : > { %889 = vst.msk [vmem:[#allocation3 + $0x30] sm:$0xff] %vm882_vm5, %v847_v31 }
  0xff   : > { %793 = vst.msk [vmem:[#allocation3 + $0x38] sm:$0xff] %vm785_vm4, %v752_v54  ;;  %1691 = vrot.lane.b32.xlu1 %v2717_v55, %s2405_s26  ;;  %v2984_v55 = vld [vmem:[#allocation2 + $0xb2] sm:$0xff] }
 0x100   : > { %1405 = vrot.lane.b32.xlu0 %v2775_v62, %s2402_s18 }
 0x101   : > { %v1490_v12 = vpop.permute.xlu1 %1489  ;;  %v1396_v13 = vpop.permute.xlu0 %1395 }
 0x102   : > { %1537 = vst.msk [vmem:[#allocation3] sm:$0xff] %vm785_vm4, %v1490_v12 }
 0x103   : > { %1442 = vst.msk [vmem:[#allocation3 + $0x8] sm:$0xff] %vm688_vm3, %v1396_v13  ;;  %858 = vrot.lane.b32.xlu1 %v2970_v11, %s2404_s17 }
 0x104   : > { %763 = vrot.lane.b32.xlu0 %v2856_v20, %s2403_s27 }
 0x105   : > { %v849_v32 = vpop.permute.xlu1 %848  ;;  %v560_v14 = vpop.permute.xlu0 %559 }
 0x106   : > { %890 = vst.msk [vmem:[#allocation3 + $0x38] sm:$0xff] %vm882_vm5, %v849_v32 }
 0x107   : > { %600 = vst.msk [vmem:[#allocation3 + $0x40] sm:$0xff] %vm591_vm2, %v560_v14  ;;  %1501 = vrot.lane.b32.xlu1 %v2723_v56, %s2403_s27 }
 0x108   : > { %1407 = vrot.lane.b32.xlu0 %v2788_v0, %s2402_s18 }
 0x109   : > { %v1492_v16 = vpop.permute.xlu1 %1491  ;;  %v944_v17 = vpop.permute.xlu0 %943 }
 0x10a   : > { %1538 = vst.msk [vmem:[#allocation3 + $0x8] sm:$0xff] %vm785_vm4, %v1492_v16 }
 0x10b   : > { %986 = vst.msk [vmem:[#allocation3 + $0x30] sm:$0xff] %vm979_vm6, %v944_v17  ;;  %860 = vrot.lane.b32.xlu1 %v2984_v55, %s2404_s17 }
 0x10c   : > { %571 = vrot.lane.b32.xlu0 %v2745_v59, %s2401_s0 }
 0x10d   : > { %v562_v18 = vpop.permute.xlu1 %561  ;;  %v1586_v19 = vpop.permute.xlu0 %1585 }
 0x10e   : > { %601 = vst.msk [vmem:[#allocation3 + $0x48] sm:$0xff] %vm591_vm2, %v562_v18 }
 0x10f   : > { %1633 = vst.msk [vmem:[#allocation3] sm:$0xff] %vm882_vm5, %v1586_v19  ;;  %1503 = vrot.lane.b32.xlu1 %v2733_v57, %s2403_s27  ;;  %v3007_v57 = vld [vmem:[#allocation2 + $0xc1] sm:$0xff] }
 0x110   : > { %955 = vrot.lane.b32.xlu0 %v2882_v27, %s2405_s26 }
 0x111   : > { %v946_v56 = vpop.permute.xlu1 %945  ;;  %v657_v21 = vpop.permute.xlu0 %656 }
 0x112   : > { %v1002_v22 = vld [vmem:[#allocation3 + $0x30] sm:$0xff]  ;;  %987 = vst.msk [vmem:[#allocation3 + $0x38] sm:$0xff] %vm979_vm6, %v946_v56 }
 0x113   : > { %697 = vst.msk [vmem:[#allocation3 + $0x40] sm:$0xff] %vm688_vm3, %v657_v21  ;;  %2265 = vmatprep.mubr.msk.f32.mxu0 %vm1021_vm7, %v1002_v22  ;;  %573 = vrot.lane.b32.xlu1 %v2759_v61, %s2401_s0  ;;  %v1376_v22 = vld [vmem:[#allocation2 + $0xe1] sm:$0xff] }
 0x114   : > { %1255 = vst.msk [vmem:[#allocation3 + $0x30] sm:$0xff] %vm431_vm1, %v2634_v35  ;;  %1597 = vrot.lane.b32.xlu0 %v2808_v3, %s2404_s17 }
 0x115   : > { %v1588_v23 = vpop.permute.xlu1 %1587  ;;  %v1302_v24 = vpop.permute.xlu0 %1301 }
 0x116   : > { %1634 = vst.msk [vmem:[#allocation3 + $0x8] sm:$0xff] %vm882_vm5, %v1588_v23 }
 0x117   : > { %1347 = vst.msk [vmem:[#allocation3 + $0x10] sm:$0xff] %vm591_vm2, %v1302_v24  ;;  %957 = vrot.lane.b32.xlu1 %v2896_v40, %s2405_s26 }
 0x118   : > { %668 = vrot.lane.b32.xlu0 %v3007_v57, %s2402_s18 }
 0x119   : > { %v659_v25 = vpop.permute.xlu1 %658  ;;  %v1682_v28 = vpop.permute.xlu0 %1681  ;;  %v1003_v33 = vld [vmem:[#allocation3 + $0x38] sm:$0xff] }
 0x11a   : > { %698 = vst.msk [vmem:[#allocation3 + $0x48] sm:$0xff] %vm688_vm3, %v659_v25  ;;  %2266 = vmatmul.mubr.msk.f32.gmra.mxu0 %vm1021_vm7, %v1003_v33  ;;  %v1568_v33 = vld [vmem:[#allocation2 + $0xe2] sm:$0xff] }
 0x11b   : > { %1729 = vst.msk [vmem:[#allocation3] sm:$0xff] %vm979_vm6, %v1682_v28  ;;  %1599 = vrot.lane.b32.xlu1 %v2822_v8, %s2404_s17  ;;  %v1567_v28 = vld [vmem:[#allocation2 + $0xda] sm:$0xff] }
 0x11c   : > { %1256 = vst.msk [vmem:[#allocation3 + $0x38] sm:$0xff] %vm431_vm1, %v2636_v36  ;;  %1313 = vrot.lane.b32.xlu0 %v2634_v35, %s2401_s0 }
 0x11d   : > { %v1304_v37 = vpop.permute.xlu1 %1303  ;;  %v754_v38 = vpop.permute.xlu0 %753 }
 0x11e   : > { %1348 = vst.msk [vmem:[#allocation3 + $0x18] sm:$0xff] %vm591_vm2, %v1304_v37 }
 0x11f   : > { %794 = vst.msk [vmem:[#allocation3 + $0x40] sm:$0xff] %vm785_vm4, %v754_v38  ;;  %670 = vrot.lane.b32.xlu1 %v3024_v34, %s2402_s18 }
 0x120   : > { %1693 = vrot.lane.b32.xlu0 %v2743_v58, %s2405_s26  ;;  %v3045_v58 = vld [vmem:[#allocation2 + $0xc2] sm:$0xff] }
 0x121   : > { %v1684_v26 = vpop.permute.xlu1 %1683  ;;  %v1398_v39 = vpop.permute.xlu0 %1397 }
 0x122   : > { %v1745_v41 = vld [vmem:[#allocation3] sm:$0xff]  ;;  %1730 = vst.msk [vmem:[#allocation3 + $0x8] sm:$0xff] %vm979_vm6, %v1684_v26 }
 0x123   : > { %1443 = vst.msk [vmem:[#allocation3 + $0x10] sm:$0xff] %vm688_vm3, %v1398_v39  ;;  %2286 = vmatprep.mubr.msk.f32.mxu1 %vm1021_vm7, %v1745_v41  ;;  %1315 = vrot.lane.b32.xlu1 %v2636_v36, %s2401_s0 }
 0x124   : > { %765 = vrot.lane.b32.xlu0 %v2930_v30, %s2403_s27 }
 0x125   : > { %v851_v35 = vpop.permute.xlu1 %850  ;;  %v756_v42 = vpop.permute.xlu0 %755 }
 0x126   : > { %891 = vst.msk [vmem:[#allocation3 + $0x40] sm:$0xff] %vm882_vm5, %v851_v35 }
 0x127   : > { %795 = vst.msk [vmem:[#allocation3 + $0x48] sm:$0xff] %vm785_vm4, %v756_v42  ;;  %1695 = vrot.lane.b32.xlu1 %v2757_v60, %s2405_s26 }
 0x128   : > { %1409 = vrot.lane.b32.xlu0 %v2842_v15, %s2402_s18 }
 0x129   : > { %v1494_v43 = vpop.permute.xlu1 %1493  ;;  %v1400_v45 = vpop.permute.xlu0 %1399  ;;  %v1746_v36 = vld [vmem:[#allocation3 + $0x8] sm:$0xff] }
 0x12a   : > { %1539 = vst.msk [vmem:[#allocation3 + $0x10] sm:$0xff] %vm785_vm4, %v1494_v43  ;;  %2287 = vmatmul.mubr.msk.f32.vlgmr.msra.gmra.mxu1 %vm1021_vm7, %v1746_v36 }
 0x12b   : > { %1444 = vst.msk [vmem:[#allocation3 + $0x18] sm:$0xff] %vm688_vm3, %v1400_v45  ;;  %862 = vrot.lane.b32.xlu1 %v3045_v58, %s2404_s17 }
 0x12c   : > { %767 = vrot.lane.b32.xlu0 %v2947_v4, %s2403_s27 }
 0x12d   : > { %v853_v60 = vpop.permute.xlu1 %852  ;;  %v564_v46 = vpop.permute.xlu0 %563 }
 0x12e   : > { %892 = vst.msk [vmem:[#allocation3 + $0x48] sm:$0xff] %vm882_vm5, %v853_v60 }
 0x12f   : > { %602 = vst.msk [vmem:[#allocation3 + $0x50] sm:$0xff] %vm591_vm2, %v564_v46  ;;  %1505 = vrot.lane.b32.xlu1 %v2775_v62, %s2403_s27 }
 0x130   : > { %1411 = vrot.lane.b32.xlu0 %v2856_v20, %s2402_s18 }
 0x131   : > { %v1496_v29 = vpop.permute.xlu1 %1495  ;;  %v948_v48 = vpop.permute.xlu0 %947 }
 0x132   : > { %1540 = vst.msk [vmem:[#allocation3 + $0x18] sm:$0xff] %vm785_vm4, %v1496_v29 }
 0x133   : > { %988 = vst.msk [vmem:[#allocation3 + $0x40] sm:$0xff] %vm979_vm6, %v948_v48  ;;  %959 = vrot.lane.b32.xlu1 %v2970_v11, %s2405_s26 }
 0x134   : > { %864 = vrot.lane.b32.xlu0 %v3060_v47, %s2404_s17 }
 0x135   : > { %v566_v51 = vpop.permute.xlu1 %565  ;;  %v1590_v52 = vpop.permute.xlu0 %1589 }
 0x136   : > { %603 = vst.msk [vmem:[#allocation3 + $0x58] sm:$0xff] %vm591_vm2, %v566_v51 }
 0x137   : > { %1635 = vst.msk [vmem:[#allocation3 + $0x10] sm:$0xff] %vm882_vm5, %v1590_v52  ;;  %1601 = vrot.lane.b32.xlu1 %v2882_v27, %s2404_s17 }
 0x138   : > { %1507 = vrot.lane.b32.xlu0 %v2788_v0, %s2403_s27 }
 0x139   : > { %v950_v62 = vpop.permute.xlu1 %949  ;;  %v661_v63 = vpop.permute.xlu0 %660 }
 0x13a   : > { %v1004_v1 = vld [vmem:[#allocation3 + $0x40] sm:$0xff]  ;;  %989 = vst.msk [vmem:[#allocation3 + $0x48] sm:$0xff] %vm979_vm6, %v950_v62 }
 0x13b   : > { %699 = vst.msk [vmem:[#allocation3 + $0x50] sm:$0xff] %vm688_vm3, %v661_v63  ;;  %2268 = vmatprep.mubr.msk.f32.mxu0 %vm1021_vm7, %v1004_v1  ;;  %1317 = vrot.lane.b32.xlu1 %v2683_v50, %s2401_s0 }
 0x13c   : > { %1257 = vst.msk [vmem:[#allocation3 + $0x40] sm:$0xff] %vm431_vm1, %v2683_v50  ;;  %961 = vrot.lane.b32.xlu0 %v2984_v55, %s2405_s26 }
 0x13d   : > { %v1592_v0 = vpop.permute.xlu1 %1591  ;;  %v1306_v2 = vpop.permute.xlu0 %1305 }
 0x13e   : > { %1636 = vst.msk [vmem:[#allocation3 + $0x18] sm:$0xff] %vm882_vm5, %v1592_v0 }
 0x13f   : > { %1349 = vst.msk [vmem:[#allocation3 + $0x20] sm:$0xff] %vm591_vm2, %v1306_v2  ;;  %1697 = vrot.lane.b32.xlu1 %v2808_v3, %s2405_s26 }
 0x140   : > { %1603 = vrot.lane.b32.xlu0 %v2896_v40, %s2404_s17 }
 0x141   : > { %v663_v5 = vpop.permute.xlu1 %662  ;;  %v1686_v6 = vpop.permute.xlu0 %1685  ;;  %v1005_v7 = vld [vmem:[#allocation3 + $0x48] sm:$0xff] }
 0x142   : > { %700 = vst.msk [vmem:[#allocation3 + $0x58] sm:$0xff] %vm688_vm3, %v663_v5  ;;  %2269 = vmatmul.mubr.msk.f32.gmra.mxu0 %vm1021_vm7, %v1005_v7 }
 0x143   : > { %1731 = vst.msk [vmem:[#allocation3 + $0x10] sm:$0xff] %vm979_vm6, %v1686_v6  ;;  %1413 = vrot.lane.b32.xlu1 %v2930_v30, %s2402_s18 }
 0x144   : > { %1258 = vst.msk [vmem:[#allocation3 + $0x48] sm:$0xff] %vm431_vm1, %v2699_v53  ;;  %1319 = vrot.lane.b32.xlu0 %v2699_v53, %s2401_s0 }
 0x145   : > { %v1308_v50 = vpop.permute.xlu1 %1307 }
 0x146   : > { %v758_v3 = vpop.permute.xlu0 %757  ;;  %1350 = vst.msk [vmem:[#allocation3 + $0x28] sm:$0xff] %vm591_vm2, %v1308_v50 }
 0x147   : > { %796 = vst.msk [vmem:[#allocation3 + $0x50] sm:$0xff] %vm785_vm4, %v758_v3  ;;  %1415 = vrot.lane.b32.xlu1 %v2947_v4, %s2402_s18 }
 0x148   : > { %1699 = vrot.lane.b32.xlu0 %v2822_v8, %s2405_s26 }
 0x149   : > { %v1688_v9 = vpop.permute.xlu1 %1687 }
 0x14a   : > { %v1402_v10 = vpop.permute.xlu0 %1401  ;;  %v1747_v31 = vld [vmem:[#allocation3 + $0x10] sm:$0xff]  ;;  %1732 = vst.msk [vmem:[#allocation3 + $0x18] sm:$0xff] %vm979_vm6, %v1688_v9 }
 0x14b   : > { %1445 = vst.msk [vmem:[#allocation3 + $0x20] sm:$0xff] %vm688_vm3, %v1402_v10  ;;  %2289 = vmatprep.mubr.msk.f32.mxu1 %vm1021_vm7, %v1747_v31  ;;  %1511 = vrot.lane.b32.xlu1 %v2856_v20, %s2403_s27 }
 0x14c   : > { %1509 = vrot.lane.b32.xlu0 %v2842_v15, %s2403_s27 }
 0x14d   : > { %v855_v53 = vpop.permute.xlu1 %854 }
 0x14e   : > { %v760_v8 = vpop.permute.xlu0 %759  ;;  %893 = vst.msk [vmem:[#allocation3 + $0x50] sm:$0xff] %vm882_vm5, %v855_v53 }
 0x14f   : > { %797 = vst.msk [vmem:[#allocation3 + $0x58] sm:$0xff] %vm785_vm4, %v760_v8  ;;  %1321 = vrot.lane.b32.xlu1 %v2745_v59, %s2401_s0 }
 0x150   : > { %1605 = vrot.lane.b32.xlu0 %v2970_v11, %s2404_s17 }
 0x151   : > { %v1498_v54 = vpop.permute.xlu1 %1497  ;;  %v1748_v13 = vld [vmem:[#allocation3 + $0x18] sm:$0xff] }
 0x152   : > { %v1404_v12 = vpop.permute.xlu0 %1403  ;;  %1541 = vst.msk [vmem:[#allocation3 + $0x20] sm:$0xff] %vm785_vm4, %v1498_v54  ;;  %2290 = vmatmul.mubr.msk.f32.gmra.mxu1 %vm1021_vm7, %v1748_v13 }
 0x153   : > { %1446 = vst.msk [vmem:[#allocation3 + $0x28] sm:$0xff] %vm688_vm3, %v1404_v12  ;;  %1701 = vrot.lane.b32.xlu1 %v2882_v27, %s2405_s26 }
 0x154   : > { %1607 = vrot.lane.b32.xlu0 %v2984_v55, %s2404_s17 }
 0x155   : > { %v857_v15 = vpop.permute.xlu1 %856 }
 0x156   : > { %v568_v20 = vpop.permute.xlu0 %567  ;;  %894 = vst.msk [vmem:[#allocation3 + $0x58] sm:$0xff] %vm882_vm5, %v857_v15 }
 0x157   : > { %604 = vst.msk [vmem:[#allocation3 + $0x60] sm:$0xff] %vm591_vm2, %v568_v20  ;;  %1417 = vrot.lane.b32.xlu1 %v3007_v57, %s2402_s18  ;;  %v1247_v20 = vld [vmem:[#allocation2 + $0xd8] sm:$0xff] }
 0x158   : > { %1323 = vrot.lane.b32.xlu0 %v2759_v61, %s2401_s0 }
 0x159   : > { %v1500_v32 = vpop.permute.xlu1 %1499 }
 0x15a   : > { %v952_v14 = vpop.permute.xlu0 %951  ;;  %1542 = vst.msk [vmem:[#allocation3 + $0x28] sm:$0xff] %vm785_vm4, %v1500_v32 }
 0x15b   : > { %990 = vst.msk [vmem:[#allocation3 + $0x50] sm:$0xff] %vm979_vm6, %v952_v14  ;;  %1419 = vrot.lane.b32.xlu1 %v3024_v34, %s2402_s18 }
 0x15c   : > { %1703 = vrot.lane.b32.xlu0 %v2896_v40, %s2405_s26 }
 0x15d   : > { %v570_v27 = vpop.permute.xlu1 %569 }
 0x15e   : > { %v1594_v16 = vpop.permute.xlu0 %1593  ;;  %605 = vst.msk [vmem:[#allocation3 + $0x68] sm:$0xff] %vm591_vm2, %v570_v27 }
 0x15f   : > { %1637 = vst.msk [vmem:[#allocation3 + $0x20] sm:$0xff] %vm882_vm5, %v1594_v16  ;;  %1515 = vrot.lane.b32.xlu1 %v2947_v4, %s2403_s27  ;;  %v1375_v4 = vld [vmem:[#allocation2 + $0xd9] sm:$0xff] }
 0x160   : > { %1513 = vrot.lane.b32.xlu0 %v2930_v30, %s2403_s27 }
 0x161   : > { %v954_v17 = vpop.permute.xlu1 %953 }
 0x162   : > { %v665_v18 = vpop.permute.xlu0 %664  ;;  %v1006_v19 = vld [vmem:[#allocation3 + $0x50] sm:$0xff]  ;;  %991 = vst.msk [vmem:[#allocation3 + $0x58] sm:$0xff] %vm979_vm6, %v954_v17 }
 0x163   : > { %701 = vst.msk [vmem:[#allocation3 + $0x60] sm:$0xff] %vm688_vm3, %v665_v18  ;;  %2271 = vmatprep.mubr.msk.f32.mxu0 %vm1021_vm7, %v1006_v19  ;;  %1325 = vrot.lane.b32.xlu1 %v2907_v44, %s2401_s0  ;;  %v1248_v18 = vld [vmem:[#allocation2 + $0xe0] sm:$0xff] }
 0x164   : > { %1259 = vst.msk [vmem:[#allocation3 + $0x50] sm:$0xff] %vm431_vm1, %v2745_v59  ;;  %1609 = vrot.lane.b32.xlu0 %v3045_v58, %s2404_s17 }
 0x165   : > { %v1596_v40 = vpop.permute.xlu1 %1595 }
 0x166   : > { %v1310_v30 = vpop.permute.xlu0 %1309  ;;  %1638 = vst.msk [vmem:[#allocation3 + $0x28] sm:$0xff] %vm882_vm5, %v1596_v40 }
 0x167   : > { %1351 = vst.msk [vmem:[#allocation3 + $0x30] sm:$0xff] %vm591_vm2, %v1310_v30  ;;  %1705 = vrot.lane.b32.xlu1 %v2970_v11, %s2405_s26 }
 0x168   : > { %1611 = vrot.lane.b32.xlu0 %v3060_v47, %s2404_s17 }
 0x169   : > { %v667_v59 = vpop.permute.xlu1 %666  ;;  %v1007_v21 = vld [vmem:[#allocation3 + $0x58] sm:$0xff] }
 0x16a   : > { %v1690_v56 = vpop.permute.xlu0 %1689  ;;  %702 = vst.msk [vmem:[#allocation3 + $0x68] sm:$0xff] %vm688_vm3, %v667_v59  ;;  %2272 = vmatmul.mubr.msk.f32.gmra.mxu0 %vm1021_vm7, %v1007_v21 }
 0x16b   : > { %1733 = vst.msk [vmem:[#allocation3 + $0x20] sm:$0xff] %vm979_vm6, %v1690_v56  ;;  %1421 = vrot.lane.b32.xlu1 %v1375_v4, %s2402_s18 }
 0x16c   : > { %1260 = vst.msk [vmem:[#allocation3 + $0x58] sm:$0xff] %vm431_vm1, %v2759_v61  ;;  %1327 = vrot.lane.b32.xlu0 %v2922_v49, %s2401_s0 }
 0x16d   : > { %v1312_v11 = vpop.permute.xlu1 %1311 }
 0x16e   : > { %v762_v23 = vpop.permute.xlu0 %761  ;;  %1352 = vst.msk [vmem:[#allocation3 + $0x38] sm:$0xff] %vm591_vm2, %v1312_v11 }
 0x16f   : > { %798 = vst.msk [vmem:[#allocation3 + $0x60] sm:$0xff] %vm785_vm4, %v762_v23  ;;  %1423 = vrot.lane.b32.xlu1 %v1376_v22, %s2402_s18 }
 0x170   : > { %1707 = vrot.lane.b32.xlu0 %v2984_v55, %s2405_s26 }
 0x171   : > { %v1692_v24 = vpop.permute.xlu1 %1691 }
 0x172   : > { %v1406_v25 = vpop.permute.xlu0 %1405  ;;  %v1749_v61 = vld [vmem:[#allocation3 + $0x20] sm:$0xff]  ;;  %1734 = vst.msk [vmem:[#allocation3 + $0x28] sm:$0xff] %vm979_vm6, %v1692_v24 }
 0x173   : > { %1447 = vst.msk [vmem:[#allocation3 + $0x30] sm:$0xff] %vm688_vm3, %v1406_v25  ;;  %2292 = vmatprep.mubr.msk.f32.mxu1 %vm1021_vm7, %v1749_v61  ;;  %1519 = vrot.lane.b32.xlu1 %v3024_v34, %s2403_s27 }
 0x174   : > { %1517 = vrot.lane.b32.xlu0 %v3007_v57, %s2403_s27 }
 0x175   : > { %v859_v55 = vpop.permute.xlu1 %858 }
 0x176   : > { %v764_v37 = vpop.permute.xlu0 %763  ;;  %895 = vst.msk [vmem:[#allocation3 + $0x60] sm:$0xff] %vm882_vm5, %v859_v55 }
 0x177   : > { %799 = vst.msk [vmem:[#allocation3 + $0x68] sm:$0xff] %vm785_vm4, %v764_v37  ;;  %1615 = vrot.lane.b32.xlu1 %v1568_v33, %s2404_s17 }
 0x178   : > { %1613 = vrot.lane.b32.xlu0 %v1567_v28, %s2404_s17 }
 0x179   : > { %v1502_v38 = vpop.permute.xlu1 %1501  ;;  %v1750_v39 = vld [vmem:[#allocation3 + $0x28] sm:$0xff] }
 0x17a   : > { %v1408_v26 = vpop.permute.xlu0 %1407  ;;  %1543 = vst.msk [vmem:[#allocation3 + $0x30] sm:$0xff] %vm785_vm4, %v1502_v38  ;;  %2293 = vmatmul.mubr.msk.f32.gmra.mxu1 %vm1021_vm7, %v1750_v39 }
 0x17b   : > { %1448 = vst.msk [vmem:[#allocation3 + $0x38] sm:$0xff] %vm688_vm3, %v1408_v26  ;;  %1711 = vrot.lane.b32.xlu1 %v3060_v47, %s2405_s26 }
 0x17c   : > { %1709 = vrot.lane.b32.xlu0 %v3045_v58, %s2405_s26 }
 0x17d   : > { %v861_v57 = vpop.permute.xlu1 %860 }
 0x17e   : > { %v572_v34 = vpop.permute.xlu0 %571  ;;  %896 = vst.msk [vmem:[#allocation3 + $0x68] sm:$0xff] %vm882_vm5, %v861_v57 }
 0x17f   : > { %606 = vst.msk [vmem:[#allocation3 + $0x70] sm:$0xff] %vm591_vm2, %v572_v34 }
 0x181   : > { %v1504_v41 = vpop.permute.xlu1 %1503 }
 0x182   : > { %v956_v35 = vpop.permute.xlu0 %955  ;;  %1544 = vst.msk [vmem:[#allocation3 + $0x38] sm:$0xff] %vm785_vm4, %v1504_v41 }
 0x183   : > { %992 = vst.msk [vmem:[#allocation3 + $0x60] sm:$0xff] %vm979_vm6, %v956_v35 }
 0x185   : > { %v574_v42 = vpop.permute.xlu1 %573 }
 0x186   : > { %v1598_v43 = vpop.permute.xlu0 %1597  ;;  %607 = vst.msk [vmem:[#allocation3 + $0x78] sm:$0xff] %vm591_vm2, %v574_v42 }
 0x187   : > { %1639 = vst.msk [vmem:[#allocation3 + $0x30] sm:$0xff] %vm882_vm5, %v1598_v43 }
 0x189   : > { %v958_v58 = vpop.permute.xlu1 %957 }
 0x18a   : > { %v669_v45 = vpop.permute.xlu0 %668  ;;  %v1008_v36 = vld [vmem:[#allocation3 + $0x60] sm:$0xff]  ;;  %993 = vst.msk [vmem:[#allocation3 + $0x68] sm:$0xff] %vm979_vm6, %v958_v58 }
 0x18b   : > { %703 = vst.msk [vmem:[#allocation3 + $0x70] sm:$0xff] %vm688_vm3, %v669_v45  ;;  %2274 = vmatprep.mubr.msk.f32.mxu0 %vm1021_vm7, %v1008_v36 }
 0x18c   : > { %1261 = vst.msk [vmem:[#allocation3 + $0x60] sm:$0xff] %vm431_vm1, %v2907_v44  ;;  %v3209_v44 = vld [vmem:[%s3386_s4] ss:$0 sm:$0xff] }
 0x18d   : > { %v1600_v60 = vpop.permute.xlu1 %1599 }
 0x18e   : > { %v1314_v46 = vpop.permute.xlu0 %1313  ;;  %1640 = vst.msk [vmem:[#allocation3 + $0x38] sm:$0xff] %vm882_vm5, %v1600_v60 }
 0x18f   : > { %1353 = vst.msk [vmem:[#allocation3 + $0x40] sm:$0xff] %vm591_vm2, %v1314_v46 }
 0x191   : > { %v671_v47 = vpop.permute.xlu1 %670  ;;  %v1009_v48 = vld [vmem:[#allocation3 + $0x68] sm:$0xff] }
 0x192   : > { %v1694_v29 = vpop.permute.xlu0 %1693  ;;  %704 = vst.msk [vmem:[#allocation3 + $0x78] sm:$0xff] %vm688_vm3, %v671_v47  ;;  %2275 = vmatmul.mubr.msk.f32.gmra.mxu0 %vm1021_vm7, %v1009_v48 }
 0x193   : > { %1735 = vst.msk [vmem:[#allocation3 + $0x30] sm:$0xff] %vm979_vm6, %v1694_v29 }
 0x194   : > { %1262 = vst.msk [vmem:[#allocation3 + $0x68] sm:$0xff] %vm431_vm1, %v2922_v49 }
 0x195   : > { %v1316_v51 = vpop.permute.xlu1 %1315 }
 0x196   : > { %v766_v52 = vpop.permute.xlu0 %765  ;;  %1354 = vst.msk [vmem:[#allocation3 + $0x48] sm:$0xff] %vm591_vm2, %v1316_v51 }
 0x197   : > { %800 = vst.msk [vmem:[#allocation3 + $0x70] sm:$0xff] %vm785_vm4, %v766_v52  ;;  %v2258_v62 = vpop.f32.mrf.mxu0 }
 0x198   : > { %v1142_v63 = vadd.f32 %v2258_v62, %v3209_v44 }
 0x199   : > { %v1136_v1 = vpop.f32.mrf.mxu0  ;;  %v1696_v0 = vpop.permute.xlu1 %1695 }
 0x19a   : > { %1217 = vst.msk [vmem:[%s2574_s11 + $0x8] sm:$0xff] %vm1215_vm8, %v1142_v63  ;;  %v1137_v49 = vadd.f32 %v3209_v44, %v1136_v1  ;;  %v1410_v2 = vpop.permute.xlu0 %1409  ;;  %v1751_v5 = vld [vmem:[#allocation3 + $0x30] sm:$0xff] }
 0x19b   : > { %1736 = vst.msk [vmem:[#allocation3 + $0x38] sm:$0xff] %vm979_vm6, %v1696_v0  ;;  %2295 = vmatprep.mubr.msk.f32.mxu1 %vm1021_vm7, %v1751_v5 }
 0x19c   : > { %1449 = vst.msk [vmem:[#allocation3 + $0x40] sm:$0xff] %vm688_vm3, %v1410_v2 }
 0x19d   : > { %1216 = vst.msk [vmem:[%s2574_s11] sm:$0xff] %vm1215_vm8, %v1137_v49  ;;  %v863_v7 = vpop.permute.xlu1 %862 }
 0x19e   : > { %v768_v6 = vpop.permute.xlu0 %767  ;;  %897 = vst.msk [vmem:[#allocation3 + $0x70] sm:$0xff] %vm882_vm5, %v863_v7 }
 0x19f   : > { %801 = vst.msk [vmem:[#allocation3 + $0x78] sm:$0xff] %vm785_vm4, %v768_v6 }
 0x1a1   : > { %v1506_v3 = vpop.permute.xlu1 %1505 }
 0x1a2   : > { %v1412_v50 = vpop.permute.xlu0 %1411  ;;  %v1752_v9 = vld [vmem:[#allocation3 + $0x38] sm:$0xff]  ;;  %1545 = vst.msk [vmem:[#allocation3 + $0x40] sm:$0xff] %vm785_vm4, %v1506_v3 }
 0x1a3   : > { %1450 = vst.msk [vmem:[#allocation3 + $0x48] sm:$0xff] %vm688_vm3, %v1412_v50  ;;  %2296 = vmatmul.mubr.msk.f32.gmra.mxu1 %vm1021_vm7, %v1752_v9 }
 0x1a5   : > { %v960_v31 = vpop.permute.xlu1 %959 }
 0x1a6   : > { %v865_v10 = vpop.permute.xlu0 %864  ;;  %994 = vst.msk [vmem:[#allocation3 + $0x70] sm:$0xff] %vm979_vm6, %v960_v31 }
 0x1a7   : > { %898 = vst.msk [vmem:[#allocation3 + $0x78] sm:$0xff] %vm882_vm5, %v865_v10  ;;  %v2261_v53 = vpop.f32.mrf.mxu0 }
 0x1a8   : > { %v1152_v8 = vadd.f32 %v2261_v53, %v3209_v44 }
 0x1a9   : > { %v1146_v54 = vpop.f32.mrf.mxu0  ;;  %v1602_v15 = vpop.permute.xlu1 %1601 }
 0x1aa   : > { %1219 = vst.msk [vmem:[%s2574_s11 + $0x28] sm:$0xff] %vm1215_vm8, %v1152_v8  ;;  %v1147_v12 = vadd.f32 %v3209_v44, %v1146_v54  ;;  %v1508_v13 = vpop.permute.xlu0 %1507 }
 0x1ab   : > { %1546 = vst.msk [vmem:[#allocation3 + $0x48] sm:$0xff] %vm785_vm4, %v1508_v13 }
 0x1ac   : > { %1641 = vst.msk [vmem:[#allocation3 + $0x40] sm:$0xff] %vm882_vm5, %v1602_v15 }
 0x1ad   : > { %1218 = vst.msk [vmem:[%s2574_s11 + $0x20] sm:$0xff] %vm1215_vm8, %v1147_v12  ;;  %v1318_v14 = vpop.permute.xlu1 %1317  ;;  %v1010_v27 = vld [vmem:[#allocation3 + $0x70] sm:$0xff] }
 0x1ae   : > { %v962_v32 = vpop.permute.xlu0 %961  ;;  %1355 = vst.msk [vmem:[#allocation3 + $0x50] sm:$0xff] %vm591_vm2, %v1318_v14  ;;  %2277 = vmatprep.mubr.msk.f32.mxu0 %vm1021_vm7, %v1010_v27 }
 0x1af   : > { %995 = vst.msk [vmem:[#allocation3 + $0x78] sm:$0xff] %vm979_vm6, %v962_v32 }
 0x1b0   : > { %1263 = vst.msk [vmem:[#allocation3 + $0x70] sm:$0xff] %vm431_vm1, %v1247_v20 }
 0x1b1   : > { %v1698_v17 = vpop.permute.xlu1 %1697 }
 0x1b2   : > { %v1604_v16 = vpop.permute.xlu0 %1603  ;;  %1737 = vst.msk [vmem:[#allocation3 + $0x40] sm:$0xff] %vm979_vm6, %v1698_v17 }
 0x1b3   : > { %1642 = vst.msk [vmem:[#allocation3 + $0x48] sm:$0xff] %vm882_vm5, %v1604_v16 }
 0x1b5   : > { %v1414_v40 = vpop.permute.xlu1 %1413 }
 0x1b6   : > { %v1320_v19 = vpop.permute.xlu0 %1319  ;;  %v1011_v30 = vld [vmem:[#allocation3 + $0x78] sm:$0xff]  ;;  %1451 = vst.msk [vmem:[#allocation3 + $0x50] sm:$0xff] %vm688_vm3, %v1414_v40 }
 0x1b7   : > { %1356 = vst.msk [vmem:[#allocation3 + $0x58] sm:$0xff] %vm591_vm2, %v1320_v19  ;;  %2278 = vmatmul.mubr.msk.f32.gmra.mxu0 %vm1021_vm7, %v1011_v30 }
 0x1b8   : > { %1264 = vst.msk [vmem:[#allocation3 + $0x78] sm:$0xff] %vm431_vm1, %v1248_v18 }
 0x1b9   : > { %v1416_v59 = vpop.permute.xlu1 %1415  ;;  %v1753_v56 = vld [vmem:[#allocation3 + $0x40] sm:$0xff] }
 0x1ba   : > { %v1700_v4 = vpop.permute.xlu0 %1699  ;;  %1452 = vst.msk [vmem:[#allocation3 + $0x58] sm:$0xff] %vm688_vm3, %v1416_v59  ;;  %2298 = vmatprep.mubr.msk.f32.mxu1 %vm1021_vm7, %v1753_v56 }
 0x1bb   : > { %1738 = vst.msk [vmem:[#allocation3 + $0x48] sm:$0xff] %vm979_vm6, %v1700_v4  ;;  %v2264_v21 = vpop.f32.mrf.mxu0 }
 0x1bc   : > { %v1162_v22 = vadd.f32 %v2264_v21, %v3209_v44 }
 0x1bd   : > { %v1156_v11 = vpop.f32.mrf.mxu0  ;;  %v1512_v25 = vpop.permute.xlu1 %1511 }
 0x1be   : > { %1221 = vst.msk [vmem:[%s2574_s11 + $0x48] sm:$0xff] %vm1215_vm8, %v1162_v22  ;;  %v1157_v23 = vadd.f32 %v3209_v44, %v1156_v11  ;;  %v1510_v24 = vpop.permute.xlu0 %1509 }
 0x1bf   : > { %1547 = vst.msk [vmem:[#allocation3 + $0x50] sm:$0xff] %vm785_vm4, %v1510_v24  ;;  %1548 = vst.msk [vmem:[#allocation3 + $0x58] sm:$0xff] %vm785_vm4, %v1512_v25 }
 0x1c0   : > { %1220 = vst.msk [vmem:[%s2574_s11 + $0x40] sm:$0xff] %vm1215_vm8, %v1157_v23 }
 0x1c1   : > { %v1322_v28 = vpop.permute.xlu1 %1321 }
 0x1c2   : > { %v1606_v61 = vpop.permute.xlu0 %1605  ;;  %v1754_v33 = vld [vmem:[#allocation3 + $0x48] sm:$0xff]  ;;  %1357 = vst.msk [vmem:[#allocation3 + $0x60] sm:$0xff] %vm591_vm2, %v1322_v28 }
 0x1c3   : > { %1643 = vst.msk [vmem:[#allocation3 + $0x50] sm:$0xff] %vm882_vm5, %v1606_v61  ;;  %2299 = vmatmul.mubr.msk.f32.gmra.mxu1 %vm1021_vm7, %v1754_v33 }
 0x1c5   : > { %v1702_v37 = vpop.permute.xlu1 %1701 }
 0x1c6   : > { %v1608_v55 = vpop.permute.xlu0 %1607  ;;  %1739 = vst.msk [vmem:[#allocation3 + $0x50] sm:$0xff] %vm979_vm6, %v1702_v37 }
 0x1c7   : > { %1644 = vst.msk [vmem:[#allocation3 + $0x58] sm:$0xff] %vm882_vm5, %v1608_v55 }
 0x1c9   : > { %v1418_v26 = vpop.permute.xlu1 %1417 }
 0x1ca   : > { %v1324_v38 = vpop.permute.xlu0 %1323  ;;  %1453 = vst.msk [vmem:[#allocation3 + $0x60] sm:$0xff] %vm688_vm3, %v1418_v26 }
 0x1cb   : > { %1358 = vst.msk [vmem:[#allocation3 + $0x68] sm:$0xff] %vm591_vm2, %v1324_v38 }
 0x1cd   : > { %v1420_v57 = vpop.permute.xlu1 %1419  ;;  %v1755_v34 = vld [vmem:[#allocation3 + $0x50] sm:$0xff] }
 0x1ce   : > { %v1704_v39 = vpop.permute.xlu0 %1703  ;;  %1454 = vst.msk [vmem:[#allocation3 + $0x68] sm:$0xff] %vm688_vm3, %v1420_v57  ;;  %2301 = vmatprep.mubr.msk.f32.mxu1 %vm1021_vm7, %v1755_v34 }
 0x1cf   : > { %1740 = vst.msk [vmem:[#allocation3 + $0x58] sm:$0xff] %vm979_vm6, %v1704_v39 }
 0x1d1   : > { %v1516_v35 = vpop.permute.xlu1 %1515 }
 0x1d2   : > { %v1514_v41 = vpop.permute.xlu0 %1513  ;;  %1550 = vst.msk [vmem:[#allocation3 + $0x68] sm:$0xff] %vm785_vm4, %v1516_v35 }
 0x1d3   : > { %1549 = vst.msk [vmem:[#allocation3 + $0x60] sm:$0xff] %vm785_vm4, %v1514_v41 }
 0x1d5   : > { %v1326_v43 = vpop.permute.xlu1 %1325 }
 0x1d6   : > { %v1610_v42 = vpop.permute.xlu0 %1609  ;;  %v1756_v58 = vld [vmem:[#allocation3 + $0x58] sm:$0xff]  ;;  %1359 = vst.msk [vmem:[#allocation3 + $0x70] sm:$0xff] %vm591_vm2, %v1326_v43 }
 0x1d7   : > { %1645 = vst.msk [vmem:[#allocation3 + $0x60] sm:$0xff] %vm882_vm5, %v1610_v42  ;;  %2302 = vmatmul.mubr.msk.f32.gmra.mxu1 %vm1021_vm7, %v1756_v58 }
 0x1d9   : > { %v1706_v36 = vpop.permute.xlu1 %1705 }
 0x1da   : > { %v1612_v45 = vpop.permute.xlu0 %1611  ;;  %1741 = vst.msk [vmem:[#allocation3 + $0x60] sm:$0xff] %vm979_vm6, %v1706_v36  ;;  %v2267_v60 = vpop.f32.mrf.mxu0 }
 0x1db   : > { %1646 = vst.msk [vmem:[#allocation3 + $0x68] sm:$0xff] %vm882_vm5, %v1612_v45  ;;  %v1172_v46 = vadd.f32 %v2267_v60, %v3209_v44 }
 0x1dc   : > { %v1166_v47 = vpop.f32.mrf.mxu0 }
 0x1dd   : > { %1223 = vst.msk [vmem:[%s2574_s11 + $0x68] sm:$0xff] %vm1215_vm8, %v1172_v46  ;;  %v1167_v29 = vadd.f32 %v3209_v44, %v1166_v47  ;;  %v1422_v51 = vpop.permute.xlu1 %1421 }
 0x1de   : > { %v1328_v48 = vpop.permute.xlu0 %1327  ;;  %1455 = vst.msk [vmem:[#allocation3 + $0x70] sm:$0xff] %vm688_vm3, %v1422_v51 }
 0x1df   : > { %1360 = vst.msk [vmem:[#allocation3 + $0x78] sm:$0xff] %vm591_vm2, %v1328_v48 }
 0x1e0   : > { %1222 = vst.msk [vmem:[%s2574_s11 + $0x60] sm:$0xff] %vm1215_vm8, %v1167_v29 }
 0x1e1   : > { %v1424_v62 = vpop.permute.xlu1 %1423  ;;  %v1757_v63 = vld [vmem:[#allocation3 + $0x60] sm:$0xff] }
 0x1e2   : > { %v1708_v52 = vpop.permute.xlu0 %1707  ;;  %1456 = vst.msk [vmem:[#allocation3 + $0x78] sm:$0xff] %vm688_vm3, %v1424_v62  ;;  %2304 = vmatprep.mubr.msk.f32.mxu1 %vm1021_vm7, %v1757_v63 }
 0x1e3   : > { %1742 = vst.msk [vmem:[#allocation3 + $0x68] sm:$0xff] %vm979_vm6, %v1708_v52 }
 0x1e5   : > { %v1520_v49 = vpop.permute.xlu1 %1519 }
 0x1e6   : > { %v1518_v1 = vpop.permute.xlu0 %1517  ;;  %1552 = vst.msk [vmem:[#allocation3 + $0x78] sm:$0xff] %vm785_vm4, %v1520_v49 }
 0x1e7   : > { %1551 = vst.msk [vmem:[#allocation3 + $0x70] sm:$0xff] %vm785_vm4, %v1518_v1 }
 0x1e9   : > { %v1616_v2 = vpop.permute.xlu1 %1615 }
 0x1ea   : > { %v1614_v0 = vpop.permute.xlu0 %1613  ;;  %v1758_v5 = vld [vmem:[#allocation3 + $0x68] sm:$0xff]  ;;  %1648 = vst.msk [vmem:[#allocation3 + $0x78] sm:$0xff] %vm882_vm5, %v1616_v2  ;;  %v2288_v6 = vpop.f32.mrf.mxu1 }
 0x1eb   : > { %1647 = vst.msk [vmem:[#allocation3 + $0x70] sm:$0xff] %vm882_vm5, %v1614_v0  ;;  %2305 = vmatmul.mubr.msk.f32.gmra.mxu1 %vm1021_vm7, %v1758_v5  ;;  %v1885_v7 = vadd.f32 %v2288_v6, %v3209_v44 }
 0x1ec   : > { %v1879_v50 = vpop.f32.mrf.mxu1 }
 0x1ed   : > { %2193 = vst.msk [vmem:[%s2574_s11 + $0x18] sm:$0xff] %vm1215_vm8, %v1885_v7  ;;  %v1880_v3 = vadd.f32 %v3209_v44, %v1879_v50  ;;  %v1712_v10 = vpop.permute.xlu1 %1711 }
 0x1ee   : > { %v1710_v9 = vpop.permute.xlu0 %1709  ;;  %1744 = vst.msk [vmem:[#allocation3 + $0x78] sm:$0xff] %vm979_vm6, %v1712_v10 }
 0x1ef   : > { %1743 = vst.msk [vmem:[#allocation3 + $0x70] sm:$0xff] %vm979_vm6, %v1710_v9 }
 0x1f0   : > { %2192 = vst.msk [vmem:[%s2574_s11 + $0x10] sm:$0xff] %vm1215_vm8, %v1880_v3 }
 0x1f5   : > { %v1760_v53 = vld [vmem:[#allocation3 + $0x78] sm:$0xff] }
 0x1f6   : > { %v1759_v31 = vld [vmem:[#allocation3 + $0x70] sm:$0xff] }
 0x1f7   : > { %2307 = vmatprep.mubr.msk.f32.mxu1 %vm1021_vm7, %v1759_v31 }
 0x1f8   : > { %2308 = vmatmul.mubr.msk.f32.gmra.mxu1 %vm1021_vm7, %v1760_v53 }
 0x202   : > { %v2270_v8 = vpop.f32.mrf.mxu0 }
 0x203   : > { %v1182_v54 = vadd.f32 %v2270_v8, %v3209_v44 }
 0x204   : > { %v1176_v12 = vpop.f32.mrf.mxu0 }
 0x205   : > { %1225 = vst.msk [vmem:[%s2574_s11 + $0x88] sm:$0xff] %vm1215_vm8, %v1182_v54  ;;  %v1177_v13 = vadd.f32 %v3209_v44, %v1176_v12 }
 0x207   : > { %1224 = vst.msk [vmem:[%s2574_s11 + $0x80] sm:$0xff] %vm1215_vm8, %v1177_v13 }
 0x212   : > { %v2291_v15 = vpop.f32.mrf.mxu1 }
 0x213   : > { %v1895_v20 = vadd.f32 %v2291_v15, %v3209_v44 }
 0x214   : > { %v1889_v32 = vpop.f32.mrf.mxu1 }
 0x215   : > { %2195 = vst.msk [vmem:[%s2574_s11 + $0x38] sm:$0xff] %vm1215_vm8, %v1895_v20  ;;  %v1890_v14 = vadd.f32 %v3209_v44, %v1889_v32 }
 0x217   : > { %2194 = vst.msk [vmem:[%s2574_s11 + $0x30] sm:$0xff] %vm1215_vm8, %v1890_v14 }
 0x22a   : > { %v2273_v27 = vpop.f32.mrf.mxu0 }
 0x22b   : > { %v1192_v16 = vadd.f32 %v2273_v27, %v3209_v44 }
 0x22c   : > { %v1186_v17 = vpop.f32.mrf.mxu0 }
 0x22d   : > { %1227 = vst.msk [vmem:[%s2574_s11 + $0xa8] sm:$0xff] %vm1215_vm8, %v1192_v16  ;;  %v1187_v18 = vadd.f32 %v3209_v44, %v1186_v17 }
 0x22f   : > { %1226 = vst.msk [vmem:[%s2574_s11 + $0xa0] sm:$0xff] %vm1215_vm8, %v1187_v18 }
 0x23a   : > { %v2294_v19 = vpop.f32.mrf.mxu1 }
 0x23b   : > { %v1905_v40 = vadd.f32 %v2294_v19, %v3209_v44 }
 0x23c   : > { %v1899_v30 = vpop.f32.mrf.mxu1 }
 0x23d   : > { %2197 = vst.msk [vmem:[%s2574_s11 + $0x58] sm:$0xff] %vm1215_vm8, %v1905_v40  ;;  %v1900_v4 = vadd.f32 %v3209_v44, %v1899_v30 }
 0x23f   : > { %2196 = vst.msk [vmem:[%s2574_s11 + $0x50] sm:$0xff] %vm1215_vm8, %v1900_v4 }
 0x252   : > { %v2276_v59 = vpop.f32.mrf.mxu0 }
 0x253   : > { %v1202_v56 = vadd.f32 %v2276_v59, %v3209_v44 }
 0x254   : > { %v1196_v21 = vpop.f32.mrf.mxu0 }
 0x255   : > { %1229 = vst.msk [vmem:[%s2574_s11 + $0xc8] sm:$0xff] %vm1215_vm8, %v1202_v56  ;;  %v1197_v22 = vadd.f32 %v3209_v44, %v1196_v21 }
 0x257   : > { %1228 = vst.msk [vmem:[%s2574_s11 + $0xc0] sm:$0xff] %vm1215_vm8, %v1197_v22 }
 0x263   : > { %v2297_v11 = vpop.f32.mrf.mxu1 }
 0x264   : > { %v1915_v23 = vadd.f32 %v2297_v11, %v3209_v44 }
 0x265   : > { %v1909_v24 = vpop.f32.mrf.mxu1 }
 0x266   : > { %2199 = vst.msk [vmem:[%s2574_s11 + $0x78] sm:$0xff] %vm1215_vm8, %v1915_v23  ;;  %v1910_v25 = vadd.f32 %v3209_v44, %v1909_v24 }
 0x268   : > { %2198 = vst.msk [vmem:[%s2574_s11 + $0x70] sm:$0xff] %vm1215_vm8, %v1910_v25 }
 0x277   : > { %v2279_v61 = vpop.f32.mrf.mxu0 }
 0x278   : > { %v1212_v28 = vadd.f32 %v2279_v61, %v3209_v44 }
 0x279   : > { %v1206_v33 = vpop.f32.mrf.mxu0 }
 0x27a   : > { %1231 = vst.msk [vmem:[%s2574_s11 + $0xe8] sm:$0xff] %vm1215_vm8, %v1212_v28  ;;  %v1207_v55 = vadd.f32 %v3209_v44, %v1206_v33 }
 0x27c   : > { %1230 = vst.msk [vmem:[%s2574_s11 + $0xe0] sm:$0xff] %vm1215_vm8, %v1207_v55 }
 0x283   : > { %v2300_v37 = vpop.f32.mrf.mxu1 }
 0x284   : > { %v1925_v38 = vadd.f32 %v2300_v37, %v3209_v44 }
 0x285   : > { %v1919_v26 = vpop.f32.mrf.mxu1 }
 0x286   : > { %2201 = vst.msk [vmem:[%s2574_s11 + $0x98] sm:$0xff] %vm1215_vm8, %v1925_v38  ;;  %v1920_v39 = vadd.f32 %v3209_v44, %v1919_v26 }
 0x288   : > { %2200 = vst.msk [vmem:[%s2574_s11 + $0x90] sm:$0xff] %vm1215_vm8, %v1920_v39 }
 0x297   : > { %v2303_v57 = vpop.f32.mrf.mxu1 }
 0x298   : > { %v1935_v34 = vadd.f32 %v2303_v57, %v3209_v44 }
 0x299   : > { %v1929_v41 = vpop.f32.mrf.mxu1 }
 0x29a   : > { %2203 = vst.msk [vmem:[%s2574_s11 + $0xb8] sm:$0xff] %vm1215_vm8, %v1935_v34  ;;  %v1930_v35 = vadd.f32 %v3209_v44, %v1929_v41 }
 0x29c   : > { %2202 = vst.msk [vmem:[%s2574_s11 + $0xb0] sm:$0xff] %vm1215_vm8, %v1930_v35 }
 0x2ab   : > { %v2306_v42 = vpop.f32.mrf.mxu1 }
 0x2ac   : > { %v1945_v43 = vadd.f32 %v2306_v42, %v3209_v44 }
 0x2ad   : > { %v1939_v58 = vpop.f32.mrf.mxu1 }
 0x2ae   : > { %2205 = vst.msk [vmem:[%s2574_s11 + $0xd8] sm:$0xff] %vm1215_vm8, %v1945_v43  ;;  %v1940_v45 = vadd.f32 %v3209_v44, %v1939_v58 }
 0x2b0   : > { %2204 = vst.msk [vmem:[%s2574_s11 + $0xd0] sm:$0xff] %vm1215_vm8, %v1940_v45 }
 0x2b8   : > { %v2309_v36 = vpop.f32.mrf.mxu1 }
 0x2b9   : > { %v1955_v60 = vadd.f32 %v2309_v36, %v3209_v44 }
 0x2ba   : > { %v1949_v46 = vpop.f32.mrf.mxu1 }
 0x2bb   : > { %2207 = vst.msk [vmem:[%s2574_s11 + $0xf8] sm:$0xff] %vm1215_vm8, %v1955_v60  ;;  %v1950_v47 = vadd.f32 %v3209_v44, %v1949_v46 }
 0x2bd   : > { %2206 = vst.msk [vmem:[%s2574_s11 + $0xf0] sm:$0xff] %vm1215_vm8, %v1950_v47 }
 0x2be PF: > { %s15_s22 = sadd.s32 1, %s2396_s22   ;;  %s3391_s18 = smov %s2388_s20 }
 0x2bf   : > { %p12_p0 = scmp.ge.s32.totalorder %s15_s22, 6   ;;  %s3392_s19 = smov %s2392_s21 }
 0x2c0   : > { %s3393_s20 = smov %s3396_s23  ;;  %s3394_s21 = smov %s3400_s24 }
 0x2c1   :  { %14 = sbr.rel (!%p12_p0) target bundleno = 3 (0x3), region = 98 }

</bundles_post_ra>
